<compile_context>
chip_gen: v5e
topology: v5e:2x2
jax: 0.10.0
libtpu: 0.0.40
codegen_flags: <defaults>
</compile_context>

<pallas_src>
import functools

import jax
import jax.numpy as jnp
from jax import lax
from jax.experimental import pallas as pl
from jax.experimental.pallas import tpu as pltpu

_LANE = 128


def _self_attn_kernel(x_ref, wf_ref, bf_ref, wg_ref, bg_ref, wh_ref, bh_ref,
                      gamma_ref, o_ref, k_scr, acc_scr, *,
                      tq, n_valid, n_pad, cdt, exp_dt):
    # x_ref:   (1, C, Np) block (same block for every query tile of a batch elt)
    # wf/wg:   (Cp, C), wh: (C, C)  -- compute dtype
    # bf/bg:   (Cp, 1), bh: (1, C)  -- f32
    # gamma:   (1, 1) scalar in SMEM
    # k_scr:   (Cp, Np) VMEM scratch (cached key projection, compute dtype)
    # acc_scr: (C, Np)  VMEM scratch (f32 feature accumulator)
    ni = pl.program_id(1)
    nt = pl.num_programs(1)

    # ---- per-batch-element prologue: project keys once, zero accumulator ----
    @pl.when(ni == 0)
    def _init():
        x_full = x_ref[0]                                              # (C, Np)
        k = jnp.dot(wg_ref[...], x_full,
                    preferred_element_type=jnp.float32) + bg_ref[...]  # (Cp, Np)
        k_scr[...] = k.astype(k_scr.dtype)
        acc_scr[...] = jnp.zeros_like(acc_scr)

    # ---- this query tile ----
    col0 = pl.multiple_of(ni * tq, tq)
    x_t = x_ref[0, :, pl.ds(col0, tq)]                                 # (C, TQ)

    q_t = jnp.dot(wf_ref[...], x_t,
                  preferred_element_type=jnp.float32) + bf_ref[...]    # (Cp, TQ)
    # value projection produced directly in (TQ, C) layout so the softmax
    # denominator folds in with a lane-natural broadcast (no transpose).
    v_t = lax.dot_general(x_t, wh_ref[...],
                          dimension_numbers=(((0,), (1,)), ((), ())),
                          preferred_element_type=jnp.float32) + bh_ref[...]  # (TQ, C)

    # scores against all key positions: contract the channel axis of both.
    s = lax.dot_general(q_t.astype(cdt), k_scr[...],
                        dimension_numbers=(((0,), (0,)), ((), ())),
                        preferred_element_type=jnp.float32)            # (TQ, Np)

    if n_pad != n_valid:
        # mask padded key columns out of the softmax normalization
        key_idx = lax.broadcasted_iota(jnp.int32, (1, n_pad), 1)
        s = jnp.where(key_idx < n_valid, s, -1e30)

    # row softmax over the key axis.  exp runs in exp_dt (bf16 on bf16-EUP
    # chips when fed bf16 activations, f32 otherwise); row sums stay f32.
    m = jnp.max(s, axis=-1, keepdims=True)                             # (TQ, 1)
    e = jnp.exp((s - m).astype(exp_dt))                                # (TQ, Np)
    l = jnp.sum(e, axis=-1, keepdims=True, dtype=jnp.float32)          # (TQ, 1)

    # fold 1/l into the (TQ, C) value slab (EUP approx reciprocal, not a divide)
    v_scaled = v_t * pl.reciprocal(l, approx=True)                     # (TQ, C)
    if n_pad != n_valid:
        # padded query rows must not contribute to valid output columns
        row_idx = col0 + lax.broadcasted_iota(jnp.int32, (tq, 1), 0)
        v_scaled = jnp.where(row_idx < n_valid, v_scaled, 0.0)

    # feat += value_scaled^T @ exp(scores): contract the query-tile axis.
    e_op = e if e.dtype == cdt else e.astype(cdt)
    acc_scr[...] += lax.dot_general(v_scaled.astype(cdt), e_op,
                                    dimension_numbers=(((0,), (0,)), ((), ())),
                                    preferred_element_type=jnp.float32)  # (C, Np)

    # ---- epilogue: o = gamma * feat + x, written once per batch element ----
    @pl.when(ni == nt - 1)
    def _fin():
        x_full = x_ref[0].astype(jnp.float32)
        o_ref[0] = (gamma_ref[0, 0] * acc_scr[...] + x_full).astype(o_ref.dtype)


def _vmem_capacity_bytes():
    try:
        info = pltpu.get_tpu_info()
        cap = getattr(info, "vmem_capacity_bytes", None)
        if cap:
            return int(cap)
    except Exception:
        pass
    return 64 * 1024 * 1024  # conservative: smallest-VMEM generation (v7x)


def _has_bf16_eup():
    # v6e (Trillium) and v7x have a bf16 EUP/VPU; v5e and older do not.
    try:
        kind = jax.devices()[0].device_kind.lower()
    except Exception:
        return False
    return not any(tag in kind for tag in ("v2", "v3", "v4", "v5"))


def _vmem_estimate_bytes(tq, n_pad, c, cp, in_isz, exp_isz):
    dbl = 2                                             # pipeline double-buffers
    weights = dbl * ((2 * cp * c + c * c) * in_isz + (2 * cp + c) * 4 + 4)
    xio = dbl * 2 * c * n_pad * in_isz                  # x block in + out block
    kcache = cp * n_pad * in_isz                        # cached key projection
    acc = c * n_pad * 4                                 # f32 feature accumulator
    scores = tq * n_pad * (2 * 4 + exp_isz)             # s, (s-m) f32, exp(e)
    qv = 4 * tq * c * 4                                 # q / v / v_scaled tiles
    return weights + xio + kcache + acc + scores + qv


def _pick_query_tile(n_pad, c, cp, in_isz, exp_isz, budget):
    cands = [t for t in (1024, 512, 256, 128) if t <= n_pad and n_pad % t == 0]
    if not cands:
        cands = [n_pad]
    for t in cands:
        if int(_vmem_estimate_bytes(t, n_pad, c, cp, in_isz, exp_isz) * 1.25) <= budget:
            return t
    # TODO(synk): even the smallest tile may not fit for very large N; needs a
    # key-axis chunk loop with a two-pass softmax in that regime.
    return cands[-1]


def self_attn_pallas(x_nchw, wf, bf, wg, bg, wh, bh, gamma):
    B, C, H, W = x_nchw.shape
    N = H * W
    Cp = wf.shape[0]

    # MXU operand dtype follows the input dtype (feed bf16 in production);
    # softmax stats / accumulator / epilogue stay f32 in-kernel.
    cdt = x_nchw.dtype
    out_dtype = x_nchw.dtype
    in_isz = jnp.dtype(cdt).itemsize

    low_prec = in_isz < 4
    exp_dt = cdt if (low_prec and _has_bf16_eup()) else jnp.float32
    exp_isz = jnp.dtype(exp_dt).itemsize

    # Pad the spatial axis up to the lane width so output stores stay
    # lane-dense and any H*W satisfies the (8,128) block constraint.
    n_pad = ((N + _LANE - 1) // _LANE) * _LANE
    x_flat = x_nchw.reshape(B, C, N)
    if n_pad != N:
        x_flat = jnp.pad(x_flat, ((0, 0), (0, 0), (0, n_pad - N)))

    # VMEM-capacity-aware tile choice + scoped limit (generation aware).
    cap = _vmem_capacity_bytes()
    tile_budget = int(0.80 * cap)
    tq = _pick_query_tile(n_pad, C, Cp, in_isz, exp_isz, tile_budget)
    nt = n_pad // tq
    est = _vmem_estimate_bytes(tq, n_pad, C, Cp, in_isz, exp_isz)
    vmem_limit = int(min(max(est * 1.25, 32 * 1024 * 1024), 0.85 * cap))

    wf_c = wf.astype(cdt)
    wg_c = wg.astype(cdt)
    wh_c = wh.astype(cdt)
    bf2 = bf.reshape(Cp, 1).astype(jnp.float32)
    bg2 = bg.reshape(Cp, 1).astype(jnp.float32)
    bh2 = bh.reshape(1, C).astype(jnp.float32)        # row layout for (TQ,C) values
    gamma2 = jnp.reshape(gamma, (1, 1)).astype(jnp.float32)

    kernel = functools.partial(_self_attn_kernel, tq=tq, n_valid=N,
                               n_pad=n_pad, cdt=cdt, exp_dt=exp_dt)

    full2d = lambda b, ni: (0, 0)

    cost = pl.CostEstimate(
        flops=int(2 * B * (2 * Cp * C * N + C * C * N + (Cp + C) * N * N)),
        transcendentals=int(B * N * N),
        bytes_accessed=int(2 * B * C * N * in_isz
                           + (2 * Cp * C + C * C) * in_isz
                           + (2 * Cp + C + 1) * 4),
    )

    out = pl.pallas_call(
        kernel,
        out_shape=jax.ShapeDtypeStruct((B, C, n_pad), out_dtype),
        grid_spec=pltpu.PrefetchScalarGridSpec(
            num_scalar_prefetch=0,
            grid=(B, nt),
            in_specs=[
                pl.BlockSpec((1, C, n_pad), lambda b, ni: (b, 0, 0)),   # x
                pl.BlockSpec((Cp, C), full2d),                          # Wf
                pl.BlockSpec((Cp, 1), full2d),                          # bf
                pl.BlockSpec((Cp, C), full2d),                          # Wg
                pl.BlockSpec((Cp, 1), full2d),                          # bg
                pl.BlockSpec((C, C), full2d),                           # Wh
                pl.BlockSpec((1, C), full2d),                           # bh
                pl.BlockSpec(memory_space=pltpu.MemorySpace.SMEM),      # gamma
            ],
            out_specs=pl.BlockSpec((1, C, n_pad), lambda b, ni: (b, 0, 0)),
            scratch_shapes=[
                pltpu.VMEM((Cp, n_pad), cdt),          # cached key projection
                pltpu.VMEM((C, n_pad), jnp.float32),   # feature accumulator
            ],
        ),
        compiler_params=pltpu.CompilerParams(
            dimension_semantics=("parallel", "arbitrary"),
            vmem_limit_bytes=vmem_limit),
        cost_estimate=cost,
    )(x_flat, wf_c, bf2, wg_c, bg2, wh_c, bh2, gamma2)

    if n_pad != N:
        out = out[:, :, :N]
    return out.reshape(B, C, H, W)


def self_attn_ref(x_nchw, wf, bf, wg, bg, wh, bh, gamma):
    # pure-JAX reference mirroring the PyTorch forward exactly
    B, C, H, W = x_nchw.shape
    N = H * W
    x = x_nchw.reshape(B, C, N).astype(jnp.float32)
    q = jnp.einsum('oc,bcn->bon', wf, x) + bf[None, :, None]
    k = jnp.einsum('oc,bcn->bon', wg, x) + bg[None, :, None]
    v = jnp.einsum('oc,bcn->bon', wh, x) + bh[None, :, None]
    attn = jnp.einsum('bcn,bcm->bnm', q, k)            # query^T @ key
    attn = jax.nn.softmax(attn, axis=2)                # softmax over dim=2
    feat = jnp.einsum('bcn,bnm->bcm', v, attn)         # value @ attention_map
    return (gamma * feat + x).reshape(B, C, H, W)


if __name__ == "__main__":
    B, C, H, W = 2, 4, 16, 16
    reduction = 2
    Cp = C // reduction

    key = jax.random.PRNGKey(0)
    ks = jax.random.split(key, 8)
    x = jax.random.normal(ks[0], (B, C, H, W), dtype=jnp.float32)
    wf = jax.random.normal(ks[1], (Cp, C), dtype=jnp.float32) * 0.1
    bf = jax.random.normal(ks[2], (Cp,), dtype=jnp.float32) * 0.1
    wg = jax.random.normal(ks[3], (Cp, C), dtype=jnp.float32) * 0.1
    bg = jax.random.normal(ks[4], (Cp,), dtype=jnp.float32) * 0.1
    wh = jax.random.normal(ks[5], (C, C), dtype=jnp.float32) * 0.1
    bh = jax.random.normal(ks[6], (C,), dtype=jnp.float32) * 0.1
    # PyTorch __init__ sets gamma = 0; use a nonzero deterministic value so the
    # attention path is actually exercised in the numerical check.
    gamma = jnp.array([0.5], dtype=jnp.float32)

    out = self_attn_pallas(x, wf, bf, wg, bg, wh, bh, gamma)
    out = jax.block_until_ready(out)

    ref = self_attn_ref(x, wf, bf, wg, bg, wh, bh, gamma)
    assert out.shape == (B, C, H, W)
    # f32 path; tolerance absorbs MXU rounding + EUP approx-reciprocal error
    assert jnp.allclose(out, ref, atol=2e-3, rtol=2e-3), "mismatch vs reference"
    print("KERNEL_OK")
</pallas_src>

<mosaic_0001>
module attributes {stable_mosaic.version = 11 : i64} {
  func.func @_self_attn_kernel(%arg0: i32, %arg1: i32, %arg2: memref<1x4x256xf32, #tpu.memory_space<vmem>>, %arg3: memref<2x4xf32, #tpu.memory_space<vmem>>, %arg4: memref<2x1xf32, #tpu.memory_space<vmem>>, %arg5: memref<2x4xf32, #tpu.memory_space<vmem>>, %arg6: memref<2x1xf32, #tpu.memory_space<vmem>>, %arg7: memref<4x4xf32, #tpu.memory_space<vmem>>, %arg8: memref<1x4xf32, #tpu.memory_space<vmem>>, %arg9: memref<1x1xf32, #tpu.memory_space<smem>>, %arg10: memref<1x4x256xf32, #tpu.memory_space<vmem>>, %arg11: memref<2x256xf32, #tpu.memory_space<vmem>>, %arg12: memref<4x256xf32, #tpu.memory_space<vmem>>) attributes {dimension_semantics = [#tpu.dimension_semantics<parallel>, #tpu.dimension_semantics<arbitrary>], iteration_bounds = array<i64: 2, 1>, scalar_prefetch = 0 : i64, scratch_operands = 2 : i64, tpu.core_type = #tpu.core_type<tc>, window_params = [{transform_indices = @transform_0, window_bounds = array<i64: 1, 4, 256>}, {pipeline_mode = #tpu.pipeline_mode<synchronous>, transform_indices = @transform_1, window_bounds = array<i64: 2, 4>}, {pipeline_mode = #tpu.pipeline_mode<synchronous>, transform_indices = @transform_2, window_bounds = array<i64: 2, 1>}, {pipeline_mode = #tpu.pipeline_mode<synchronous>, transform_indices = @transform_3, window_bounds = array<i64: 2, 4>}, {pipeline_mode = #tpu.pipeline_mode<synchronous>, transform_indices = @transform_4, window_bounds = array<i64: 2, 1>}, {pipeline_mode = #tpu.pipeline_mode<synchronous>, transform_indices = @transform_5, window_bounds = array<i64: 4, 4>}, {pipeline_mode = #tpu.pipeline_mode<synchronous>, transform_indices = @transform_6, window_bounds = array<i64: 1, 4>}, {transform_indices = @transform_7, window_bounds = array<i64: 1, 1>}, {transform_indices = @transform_8, window_bounds = array<i64: 1, 4, 256>}]} {
    %c0_i32 = arith.constant 0 : i32
    %0 = arith.cmpi eq, %arg1, %c0_i32 : i32
    %1 = arith.extui %0 : i1 to i32
    %c0_i32_0 = arith.constant 0 : i32
    %2 = arith.cmpi ne, %1, %c0_i32_0 : i32
    scf.if %2 {
      %c0_23 = arith.constant 0 : index
      %c0_24 = arith.constant 0 : index
      %c0_25 = arith.constant 0 : index
      %37 = vector.load %arg2[%c0_23, %c0_24, %c0_25] : memref<1x4x256xf32, #tpu.memory_space<vmem>>, vector<1x4x256xf32>
      %38 = vector.shape_cast %37 : vector<1x4x256xf32> to vector<4x256xf32>
      %c0_26 = arith.constant 0 : index
      %c0_27 = arith.constant 0 : index
      %39 = vector.load %arg5[%c0_26, %c0_27] : memref<2x4xf32, #tpu.memory_space<vmem>>, vector<2x4xf32>
      %cst_28 = arith.constant dense<0.000000e+00> : vector<2x256xf32>
      %40 = tpu.matmul %39, %38, %cst_28 {dimension_numbers = #tpu.dot_dimension_numbers<[1], [0], [0], [1], [0, 0, 1, 1], [], []>} : vector<2x4xf32>, vector<4x256xf32>, vector<2x256xf32> -> vector<2x256xf32>
      %c0_29 = arith.constant 0 : index
      %c0_30 = arith.constant 0 : index
      %41 = vector.load %arg6[%c0_29, %c0_30] : memref<2x1xf32, #tpu.memory_space<vmem>>, vector<2x1xf32>
      %42 = vector.broadcast %41 : vector<2x1xf32> to vector<2x256xf32>
      %43 = arith.addf %40, %42 : vector<2x256xf32>
      %c0_31 = arith.constant 0 : index
      %c0_32 = arith.constant 0 : index
      %44 = vector.load %arg11[%c0_31, %c0_32] : memref<2x256xf32, #tpu.memory_space<vmem>>, vector<2x256xf32>
      tpu.vector_store %arg11[%c0_31, %c0_32], %43 {strides = array<i32>} : memref<2x256xf32, #tpu.memory_space<vmem>>, vector<2x256xf32>,
      %cst_33 = arith.constant 0.000000e+00 : f32
      %45 = vector.broadcast %cst_33 : f32 to vector<4x256xf32>
      %c0_34 = arith.constant 0 : index
      %c0_35 = arith.constant 0 : index
      %46 = vector.load %arg12[%c0_34, %c0_35] : memref<4x256xf32, #tpu.memory_space<vmem>>, vector<4x256xf32>
      tpu.vector_store %arg12[%c0_34, %c0_35], %45 {strides = array<i32>} : memref<4x256xf32, #tpu.memory_space<vmem>>, vector<4x256xf32>,
    } else {
    }
    %c256_i32 = arith.constant 256 : i32
    %3 = arith.muli %arg1, %c256_i32 : i32
    %4 = tpu.assume_multiple %3, 256 : i32
    %c0 = arith.constant 0 : index
    %c0_1 = arith.constant 0 : index
    %5 = arith.index_cast %4 : i32 to index
    %6 = vector.load %arg2[%c0, %c0_1, %5] : memref<1x4x256xf32, #tpu.memory_space<vmem>>, vector<1x4x256xf32>
    %7 = vector.shape_cast %6 : vector<1x4x256xf32> to vector<4x256xf32>
    %c0_2 = arith.constant 0 : index
    %c0_3 = arith.constant 0 : index
    %8 = vector.load %arg3[%c0_2, %c0_3] : memref<2x4xf32, #tpu.memory_space<vmem>>, vector<2x4xf32>
    %cst = arith.constant dense<0.000000e+00> : vector<2x256xf32>
    %9 = tpu.matmul %8, %7, %cst {dimension_numbers = #tpu.dot_dimension_numbers<[1], [0], [0], [1], [0, 0, 1, 1], [], []>} : vector<2x4xf32>, vector<4x256xf32>, vector<2x256xf32> -> vector<2x256xf32>
    %c0_4 = arith.constant 0 : index
    %c0_5 = arith.constant 0 : index
    %10 = vector.load %arg4[%c0_4, %c0_5] : memref<2x1xf32, #tpu.memory_space<vmem>>, vector<2x1xf32>
    %11 = vector.broadcast %10 : vector<2x1xf32> to vector<2x256xf32>
    %12 = arith.addf %9, %11 : vector<2x256xf32>
    %c0_6 = arith.constant 0 : index
    %c0_7 = arith.constant 0 : index
    %13 = vector.load %arg7[%c0_6, %c0_7] : memref<4x4xf32, #tpu.memory_space<vmem>>, vector<4x4xf32>
    %cst_8 = arith.constant dense<0.000000e+00> : vector<256x4xf32>
    %14 = tpu.matmul %7, %13, %cst_8 {dimension_numbers = #tpu.dot_dimension_numbers<[0], [1], [1], [0], [0, 1, 1, 0], [], []>} : vector<4x256xf32>, vector<4x4xf32>, vector<256x4xf32> -> vector<256x4xf32>
    %c0_9 = arith.constant 0 : index
    %c0_10 = arith.constant 0 : index
    %15 = vector.load %arg8[%c0_9, %c0_10] : memref<1x4xf32, #tpu.memory_space<vmem>>, vector<1x4xf32>
    %16 = vector.broadcast %15 : vector<1x4xf32> to vector<256x4xf32>
    %17 = arith.addf %14, %16 : vector<256x4xf32>
    %c0_11 = arith.constant 0 : index
    %c0_12 = arith.constant 0 : index
    %18 = vector.load %arg11[%c0_11, %c0_12] : memref<2x256xf32, #tpu.memory_space<vmem>>, vector<2x256xf32>
    %cst_13 = arith.constant dense<0.000000e+00> : vector<256x256xf32>
    %19 = tpu.matmul %12, %18, %cst_13 {dimension_numbers = #tpu.dot_dimension_numbers<[0], [0], [1], [1], [0, 1, 1, 1], [], []>} : vector<2x256xf32>, vector<2x256xf32>, vector<256x256xf32> -> vector<256x256xf32>
    %cst_14 = arith.constant dense<0xFF800000> : vector<256xf32>
    %20 = vector.multi_reduction <maximumf>, %19, %cst_14 [1] : vector<256x256xf32> to vector<256xf32>
    %21 = vector.shape_cast %20 : vector<256xf32> to vector<256x1xf32>
    %22 = vector.broadcast %21 : vector<256x1xf32> to vector<256x256xf32>
    %23 = arith.subf %19, %22 : vector<256x256xf32>
    %24 = math.exp %23 : vector<256x256xf32>
    %cst_15 = arith.constant dense<0.000000e+00> : vector<256xf32>
    %25 = vector.multi_reduction <add>, %24, %cst_15 [1] : vector<256x256xf32> to vector<256xf32>
    %26 = vector.shape_cast %25 : vector<256xf32> to vector<256x1xf32>
    %27 = tpu.reciprocal %26 {approx = true} : vector<256x1xf32> -> vector<256x1xf32>
    %28 = vector.broadcast %27 : vector<256x1xf32> to vector<256x4xf32>
    %29 = arith.mulf %17, %28 : vector<256x4xf32>
    %c0_16 = arith.constant 0 : index
    %c0_17 = arith.constant 0 : index
    %30 = vector.load %arg12[%c0_16, %c0_17] : memref<4x256xf32, #tpu.memory_space<vmem>>, vector<4x256xf32>
    %cst_18 = arith.constant dense<0.000000e+00> : vector<4x256xf32>
    %31 = tpu.matmul %29, %24, %cst_18 {dimension_numbers = #tpu.dot_dimension_numbers<[0], [0], [1], [1], [0, 1, 1, 1], [], []>} : vector<256x4xf32>, vector<256x256xf32>, vector<4x256xf32> -> vector<4x256xf32>
    %32 = arith.addf %30, %31 : vector<4x256xf32>
    %c0_19 = arith.constant 0 : index
    %c0_20 = arith.constant 0 : index
    %33 = vector.load %arg12[%c0_19, %c0_20] : memref<4x256xf32, #tpu.memory_space<vmem>>, vector<4x256xf32>
    tpu.vector_store %arg12[%c0_19, %c0_20], %32 {strides = array<i32>} : memref<4x256xf32, #tpu.memory_space<vmem>>, vector<4x256xf32>,
    %c0_i32_21 = arith.constant 0 : i32
    %34 = arith.cmpi eq, %arg1, %c0_i32_21 : i32
    %35 = arith.extui %34 : i1 to i32
    %c0_i32_22 = arith.constant 0 : i32
    %36 = arith.cmpi ne, %35, %c0_i32_22 : i32
    scf.if %36 {
      %c0_23 = arith.constant 0 : index
      %c0_24 = arith.constant 0 : index
      %c0_25 = arith.constant 0 : index
      %37 = vector.load %arg2[%c0_23, %c0_24, %c0_25] : memref<1x4x256xf32, #tpu.memory_space<vmem>>, vector<1x4x256xf32>
      %38 = vector.shape_cast %37 : vector<1x4x256xf32> to vector<4x256xf32>
      %c0_26 = arith.constant 0 : index
      %c0_27 = arith.constant 0 : index
      %39 = memref.load %arg9[%c0_26, %c0_27] : memref<1x1xf32, #tpu.memory_space<smem>>
      %c0_28 = arith.constant 0 : index
      %c0_29 = arith.constant 0 : index
      %40 = vector.load %arg12[%c0_28, %c0_29] : memref<4x256xf32, #tpu.memory_space<vmem>>, vector<4x256xf32>
      %41 = vector.broadcast %39 : f32 to vector<4x256xf32>
      %42 = arith.mulf %41, %40 : vector<4x256xf32>
      %43 = arith.addf %42, %38 : vector<4x256xf32>
      %c0_30 = arith.constant 0 : index
      %c0_31 = arith.constant 0 : index
      %c0_32 = arith.constant 0 : index
      %44 = vector.load %arg10[%c0_30, %c0_31, %c0_32] : memref<1x4x256xf32, #tpu.memory_space<vmem>>, vector<1x4x256xf32>
      %45 = vector.shape_cast %44 : vector<1x4x256xf32> to vector<4x256xf32>
      %46 = vector.shape_cast %43 : vector<4x256xf32> to vector<1x4x256xf32>
      tpu.vector_store %arg10[%c0_30, %c0_31, %c0_32], %46 {strides = array<i32>} : memref<1x4x256xf32, #tpu.memory_space<vmem>>, vector<1x4x256xf32>,
    } else {
    }
    return
  }
  func.func @transform_0(%arg0: i32, %arg1: i32) -> (i32, i32, i32) {
    %c0_i32 = arith.constant 0 : i32
    %c0_i32_0 = arith.constant 0 : i32
    %c0_i32_1 = arith.constant 0 : i32
    return %arg0, %c0_i32, %c0_i32_0 : i32, i32, i32
  }
  func.func @transform_1(%arg0: i32, %arg1: i32) -> (i32, i32) {
    %c0_i32 = arith.constant 0 : i32
    %c0_i32_0 = arith.constant 0 : i32
    %c0_i32_1 = arith.constant 0 : i32
    return %c0_i32, %c0_i32_0 : i32, i32
  }
  func.func @transform_2(%arg0: i32, %arg1: i32) -> (i32, i32) {
    %c0_i32 = arith.constant 0 : i32
    %c0_i32_0 = arith.constant 0 : i32
    %c0_i32_1 = arith.constant 0 : i32
    return %c0_i32, %c0_i32_0 : i32, i32
  }
  func.func @transform_3(%arg0: i32, %arg1: i32) -> (i32, i32) {
    %c0_i32 = arith.constant 0 : i32
    %c0_i32_0 = arith.constant 0 : i32
    %c0_i32_1 = arith.constant 0 : i32
    return %c0_i32, %c0_i32_0 : i32, i32
  }
  func.func @transform_4(%arg0: i32, %arg1: i32) -> (i32, i32) {
    %c0_i32 = arith.constant 0 : i32
    %c0_i32_0 = arith.constant 0 : i32
    %c0_i32_1 = arith.constant 0 : i32
    return %c0_i32, %c0_i32_0 : i32, i32
  }
  func.func @transform_5(%arg0: i32, %arg1: i32) -> (i32, i32) {
    %c0_i32 = arith.constant 0 : i32
    %c0_i32_0 = arith.constant 0 : i32
    %c0_i32_1 = arith.constant 0 : i32
    return %c0_i32, %c0_i32_0 : i32, i32
  }
  func.func @transform_6(%arg0: i32, %arg1: i32) -> (i32, i32) {
    %c0_i32 = arith.constant 0 : i32
    %c0_i32_0 = arith.constant 0 : i32
    %c0_i32_1 = arith.constant 0 : i32
    return %c0_i32, %c0_i32_0 : i32, i32
  }
  func.func @transform_7(%arg0: i32, %arg1: i32) -> (i32, i32) {
    %c0_i32 = arith.constant 0 : i32
    %c0_i32_0 = arith.constant 0 : i32
    %c0_i32_1 = arith.constant 0 : i32
    return %c0_i32, %c0_i32_0 : i32, i32
  }
  func.func @transform_8(%arg0: i32, %arg1: i32) -> (i32, i32, i32) {
    %c0_i32 = arith.constant 0 : i32
    %c0_i32_0 = arith.constant 0 : i32
    %c0_i32_1 = arith.constant 0 : i32
    return %arg0, %c0_i32, %c0_i32_0 : i32, i32, i32
  }
}

</mosaic_0001>

<bundles_post_ra>
// kernel: tpu_custom_call.1
= control target key start
LH: loop header
LB: loop body
LE: loop exit
PB: predicated region body
PF: predicated region fallthrough
CT: control target
= control target key end

     0   :  { %s3373_s0 = inlined_call_operand.hbm [shape: f32[2,4,256], index: 0, kind: input, shape index: {}]   ;;  %s3374_s1 = inlined_call_operand.vmem [shape: f32[2,4], index: 1, kind: input, shape index: {}]   ;;  %s3375_s2 = inlined_call_operand.vmem [shape: f32[2,1], index: 2, kind: input, shape index: {}]   ;;  %s3376_s3 = inlined_call_operand.vmem [shape: f32[2,4], index: 3, kind: input, shape index: {}]   ;;  %s3377_s4 = inlined_call_operand.vmem [shape: f32[2,1], index: 4, kind: input, shape index: {}]   ;;  %s3378_s5 = inlined_call_operand.vmem [shape: f32[4,4], index: 5, kind: input, shape index: {}]   ;;  %s3379_s6 = inlined_call_operand.vmem [shape: f32[1,4], index: 6, kind: input, shape index: {}]   ;;  %s3380_s7 = inlined_call_operand.<no memory space> [shape: f32[1,1], index: 7, kind: input, shape index: {}]   ;;  %s3381_s8 = inlined_call_operand.hbm [shape: f32[2,4,256], index: 8, kind: output, shape index: {}]  }
   0x1   :  { %13 = sst [smem:[#allocation4]] %s3380_s7 }
   0x2   :  { %14 = vsyncpa [#allocation6], 0 }
   0x3   :  { %16 = vsyncpa [#allocation6 + $0x1], 0 }
   0x4   :  { %17 = vsyncpa [#allocation7], 0 }
   0x5   :  { %19 = vsyncpa [#allocation7 + $0x1], 0  ;;  %s2443_s29 = smov 0   ;;  %s2445_s30 = smov 0  }
   0x6   :  { %s2447_s9 = smov 0   ;;  %s2449_s10 = smov 0  }
   0x7   :  { %s2451_s11 = smov 0   ;;  %s2453_s12 = smov 0  }
   0x8 LB: > { %s1866_s7 = sadd.s32 4294967295, %s2391_s12   ;;  %s1867_s13 = sadd.s32 4294967294, %s2391_s12   ;;  %s2391_s12 = sphi %s2453_s12, %s25_s12   ;;  %s2387_s11 = sphi %s2451_s11, %s3469_s11   ;;  %s2383_s10 = sphi %s2449_s10, %s3468_s10   ;;  %s2379_s9 = sphi %s2447_s9, %s3467_s9   ;;  %s2375_s30 = sphi %s2445_s30, %s3466_s30   ;;  %s2371_s29 = sphi %s2443_s29, %s3465_s29  }
   0x9   : > { %s37_s14 = sadd.s32 1, %s2387_s11  ;;  %s44_s15 = sadd.s32 1, %s2379_s9 }
   0xa   : > { %p39_p0 = scmp.ge.s32.totalorder %s37_s14, 2  ;;  %p51_p1 = scmp.ne.s32.totalorder %s2379_s9, %s2375_s30 }
   0xb   : > { %p52_p2 = scmp.eq.s32.totalorder %s2391_s12, 0  ;;  %p57_p3 = scmp.ne.s32.totalorder %s2375_s30, %s2371_s29 }
   0xc   : > { %s3471_s14 = smov (%p39_p0, %s37_s14), 0  ;;  %p58_p5 = scmp.eq.s32.totalorder %s1866_s7, 0 }
   0xd   : > { %p2484_p4 = por %p52_p2, %p51_p1  ;;  %s41_s17 = ssub.s32 %s2387_s11, %s3471_s14 }
   0xe   : > { %p228_p6 = scmp.eq.s32.totalorder %s1866_s7, 1  ;;  %p42_p7 = scmp.eq.s32.totalorder %s41_s17, 0 }
   0xf   : > { %p2490_p8 = por %p58_p5, %p57_p3  ;;  %p234_p10 = scmp.eq.s32.totalorder %s1867_s13, 1 }
  0x10   : > { %p2494_p9 = por %p228_p6, %p51_p1  ;;  %p1869_p12 = scmp.ge.s32.totalorder %s2391_s12, 2 }
  0x11   : > { %s2499_s20 = scalar_select %p42_p7, %s2379_s9, %s44_s15  }
  0x12   : > { %p2501_p11 = por %p234_p10, %p57_p3  ;;  %p2033_p13 = scmp.lt.s32.totalorder %s2391_s12, 2 }
  0x13   : > { %s275_s22 = sand.u32 1, %s2379_s9   ;;  %s1988_s24 = sshll.u32 %s2387_s11, 3 }
  0x14   : > { %s1870_s23 = sshll.u32 %s275_s22, 3  ;;  %s284_s27 = scalar_lea.hbm %s3373_s0, %s1988_s24 }
  0x15   : > { %s279_s28 = scalar_lea.vmem [#allocation5], %s1870_s23  ;;  %s286_s17 = sshll.u32 %s284_s27, 4  ;;  %s287_s17 = int_to_ptr.hbm [resolvable:$true] %s286_s17 }
  0x16   : > { %s288_s7 = sshll.u32 %s279_s28, 4  ;;  %p2026_p0 = pnand %p2033_p13, %p2484_p4  ;;  %s289_s7 = int_to_ptr.vmem [resolvable:$true] %s288_s7 }
  0x17   : > { %p1873_p1 = scmp.ge.s32.totalorder %s2391_s12, 1  ;;  %p293_p2 = scmp.lt.s32.totalorder %s2391_s12, 3 }
  0x18   : > { %s276_s13 = scalar_lea.sflag [#allocation6], %s275_s22 }
  0x19   : > { %2028 = dma.hbm_to_vmem [thread:$0]  (!%p2026_p0), %s287_s17, 128, %s289_s7, %s276_s13  }
  0x1a   : > { %p294_p3 = pnand %p1873_p1, %p293_p2 }
  0x1c   : > { %297 = sbr.rel (%p294_p3) target bundleno = 1469 (0x5bd), region = 52 }
  0x21   : > { %s2517_s15 = sand.u32 1, %s2375_s30  }
  0x22   : > { %s1874_s23 = sshll.u32 %s2517_s15, 3  ;;  %s300_s24 = scalar_lea.sflag [#allocation6], %s2517_s15 }
  0x23   : > { %s2523_s25 = scalar_lea.vmem [#allocation5], %s1874_s23 }
  0x24   : > { %2362 = dma.done.wait (%p2490_p8), %s300_s24, 128  }
  0x25   : > { %2364 = vsyncadd (%p2490_p8), %s300_s24, 4294967168  ;;  %v2393_v0 = vmov 0   ;;  %v341_v1 = vld [vmem:[%s2523_s25] sm:$0xff]  ;;  %v343_v2 = vld [vmem:[%s3377_s4] sm:$0x3]  ;;  %vm357_vm0 = vcmask 1043456  }
  0x26   : > { %2085 = vset.pattern.permute.xlu0 %v2393_v0  ;;  %350 = vst [vmem:[#allocation1] ss:$2 sm:$0xff] %v341_v1  ;;  %v342_v3 = vld [vmem:[%s3376_s3] sm:$0x3]  ;;  %vm353_vm1 = vcmask 31744   ;;  %vm405_vm2 = vcmask 1041408  }
  0x27   : > { %346 = vperm.xlu0 %2085, %v343_v2   ;;  %v417_v4 = vld [vmem:[%s3375_s2] sm:$0x3]  ;;  %vm831_vm3 = vcmask 15360   ;;  %s1763_s26 = sld [smem:[#allocation4]]  ;;  %s1989_s27 = sshll.u32 %s2383_s10, 3 }
  0x28   : > { %v416_v7 = vld [vmem:[%s3374_s1] sm:$0x3]  ;;  %s1781_s18 = scalar_lea.hbm %s3381_s8, %s1989_s27  ;;  %s336_s17 = scalar_lea.vmem [#allocation8], %s1874_s23 }
  0x29   : > { %v476_v27 = vld [vmem:[%s3378_s5] sm:$0xf]  ;;  %s1783_s13 = sshll.u32 %s336_s17, 4  ;;  %s1785_s24 = sshll.u32 %s1781_s18, 4  ;;  %s1784_s13 = int_to_ptr.vmem [resolvable:$true] %s1783_s13  ;;  %s1786_s24 = int_to_ptr.hbm [resolvable:$true] %s1785_s24 }
  0x2a   : > { %1884 = vmatpush.xpose.msk.msra.mxu0 %vm353_vm1, %v476_v27  ;;  %s1770_s10 = scalar_lea.sflag [#allocation7], %s2517_s15  ;;  %s2323_s16 = sshra.s32 %s1786_s24, 4  ;;  %s2324_s16 = int_to_ptr.hbm [resolvable:$true] %s2323_s16 }
  0x2b   : > { %s2325_s22 = scalar_lea.hbm %s2324_s16, 8  ;;  %p2330_p7 = scmp.lt.s32.totalorder %s2324_s16, %s3381_s8 }
  0x2c   : > { %p2326_p4 = scmp.ne.s32.totalorder %s2324_s16, %s2325_s22 }
  0x2d   : > { %v351_v5 = vld.sshfl [vmem:[#allocation1] sm:$0xff pattern:$0x75316420]  ;;  %v352_v6 = vld.sshfl [vmem:[#allocation1 + $0x8] sm:$0xff pattern:$0x75316420] }
  0x2e   : > { %1876 = vmatpush.msk.msra.mxu3 %vm357_vm0, %v351_v5  ;;  %424 = vst [vmem:[#allocation1] ss:$2 sm:$0xff] %v341_v1  ;;  %p2327_p5 = pnand %p2326_p4, %p2494_p9 }
  0x2f   : > { %1877 = vmatmul.msk.f32.vlgmr.msra.gmra.mxu3 %vm353_vm1, %v342_v3  ;;  %420 = vperm.xlu0 %2085, %v417_v4  }
  0x30   : > { %1878 = vmatpush.msk.msra.mxu3 %vm357_vm0, %v352_v6  ;;  %p2328_p6 = pneg %p2327_p5 }
  0x35   : > { %v425_v8 = vld.sshfl [vmem:[#allocation1] sm:$0xff pattern:$0x75316420]  ;;  %v426_v9 = vld.sshfl [vmem:[#allocation1 + $0x8] sm:$0xff pattern:$0x75316420] }
  0x36   : > { %1880 = vmatpush.msk.msra.mxu2 %vm357_vm0, %v425_v8  ;;  %481 = vst [vmem:[#allocation1] ss:$2 sm:$0xff] %v341_v1 }
  0x37   : > { %1879 = vmatmul.msk.f32.vlgmr.msra.gmra.mxu3 %vm353_vm1, %v342_v3  ;;  %1881 = vmatmul.msk.f32.vlgmr.msra.gmra.mxu2 %vm353_vm1, %v416_v7 }
  0x38   : > { %1882 = vmatpush.msk.msra.mxu3 %vm357_vm0, %v426_v9 }
  0x3d   : > { %v482_v10 = vld.sshfl [vmem:[#allocation1] sm:$0xff pattern:$0x75316420]  ;;  %v483_v23 = vld.sshfl [vmem:[#allocation1 + $0x8] sm:$0xff pattern:$0x75316420] }
  0x3e   : > { %486 = vxpose.xlu2.b32.start.end [1/1] (short) %v482_v10, 128 }
  0x3f   : > { %1883 = vmatmul.msk.f32.vlgmr.msra.gmra.mxu3 %vm353_vm1, %v416_v7 }
  0x40   : > { %1990 = vmatpush.xpose.msk.msra.mxu3 %vm353_vm1, %v476_v27 }
  0x99   : > { %v347_v11 = vpop.permute.xlu0 %346 }
  0xa1   : > { %v421_v13 = vpop.permute.xlu0 %420 }
  0xb2   : > { %v379_v12 = vpop.f32.mrf.mxu3 }
  0xb3   : > { %v380_v18 = vadd.f32 %v379_v12, %v347_v11 }
  0xba   : > { %v399_v14 = vpop.f32.mrf.mxu3  ;;  %v453_v15 = vpop.f32.mrf.mxu2 }
  0xbb   : > { %v400_v16 = vadd.f32 %v399_v14, %v347_v11  ;;  %v454_v17 = vadd.f32 %v453_v15, %v421_v13 }
  0xbd   : > { %v404_v19 = vrot.slane %v400_v16, 6  ;;  %763 = vxpose.xlu1.b32.start.end [1/1] (short) %v454_v17, 128 }
  0xbf   : > { %v406_v20 = vsel %vm405_vm2, %v380_v18, %v404_v19 }
  0xc0   : > { %408 = vst [vmem:[#allocation2] sm:$0xf] %v406_v20 }
  0xc2   : > { %v473_v21 = vpop.f32.mrf.mxu3 }
  0xc3   : > { %v474_v22 = vadd.f32 %v473_v21, %v421_v13 }
  0xc5   : > { %795 = vxpose.xlu2.b32.start.end [1/1] (short) %v474_v22, 128 }
  0xc7   : > { %v762_v24 = vld [vmem:[#allocation2] sm:$0xf] }
  0xc8   : > { %828 = vst [vmem:[#allocation1] ss:$4 sm:$0xff] %v762_v24 }
  0xcf   : > { %v2551_v25 = vld.sshfl [vmem:[#allocation1] sm:$0xff pattern:$0x73625140]  ;;  %v2553_v26 = vld.sshfl [vmem:[#allocation1 + $0x8] sm:$0xff pattern:$0x73625140] }
  0xd0   : > { %1917 = vmatpush.msk.msra.mxu1 %vm405_vm2, %v2551_v25  ;;  %1950 = vmatpush.msk.msrb.mxu2 %vm405_vm2, %v2553_v26 }
  0xd7   : > { %v502_v28 = vpop.trf.xlu2 }
  0xd8   : > { %1885 = vmatmul.msk.f32.vlgmr.msra.gmra.mxu0 %vm353_vm1, %v502_v28 }
  0xdf   : > { %v503_v29 = vpop.trf.xlu2 }
  0xe0   : > { %1886 = vmatmul.msk.f32.gmra.mxu0 %vm353_vm1, %v503_v29 }
  0xe7   : > { %v504_v30 = vpop.trf.xlu2 }
  0xe8   : > { %1887 = vmatmul.msk.f32.gmra.mxu0 %vm353_vm1, %v504_v30 }
  0xef   : > { %v505_v31 = vpop.trf.xlu2 }
  0xf0   : > { %1888 = vmatmul.msk.f32.gmra.mxu0 %vm353_vm1, %v505_v31 }
  0xf7   : > { %v506_v32 = vpop.trf.xlu2 }
  0xf8   : > { %1889 = vmatmul.msk.f32.gmra.mxu0 %vm353_vm1, %v506_v32 }
  0xff   : > { %v507_v34 = vpop.trf.xlu2 }
 0x100   : > { %1890 = vmatmul.msk.f32.gmra.mxu0 %vm353_vm1, %v507_v34 }
 0x107   : > { %v508_v36 = vpop.trf.xlu2 }
 0x108   : > { %1891 = vmatmul.msk.f32.gmra.mxu0 %vm353_vm1, %v508_v36 }
 0x10f   : > { %v509_v38 = vpop.trf.xlu2 }
 0x110   : > { %1892 = vmatmul.msk.f32.gmra.mxu0 %vm353_vm1, %v509_v38 }
 0x117   : > { %v510_v40 = vpop.trf.xlu2 }
 0x118   : > { %1893 = vmatmul.msk.f32.gmra.mxu0 %vm353_vm1, %v510_v40 }
 0x11f   : > { %v511_v42 = vpop.trf.xlu2 }
 0x120   : > { %1894 = vmatmul.msk.f32.gmra.mxu0 %vm353_vm1, %v511_v42 }
 0x127   : > { %v512_v44 = vpop.trf.xlu2 }
 0x128   : > { %1895 = vmatmul.msk.f32.gmra.mxu0 %vm353_vm1, %v512_v44 }
 0x12f   : > { %v513_v46 = vpop.trf.xlu2 }
 0x130   : > { %1896 = vmatmul.msk.f32.gmra.mxu0 %vm353_vm1, %v513_v46 }
 0x137   : > { %v514_v48 = vpop.trf.xlu2 }
 0x138   : > { %1897 = vmatmul.msk.f32.gmra.mxu0 %vm353_vm1, %v514_v48 }
 0x13d   : > { %518 = vxpose.xlu1.b32.start.end [1/1] (short) %v483_v23, 128 }
 0x13f   : > { %v515_v50 = vpop.trf.xlu2 }
 0x140   : > { %1898 = vmatmul.msk.f32.gmra.mxu0 %vm353_vm1, %v515_v50 }
 0x147   : > { %v516_v52 = vpop.trf.xlu2 }
 0x148   : > { %1899 = vmatmul.msk.f32.gmra.mxu0 %vm353_vm1, %v516_v52 }
 0x14f   : > { %v517_v54 = vpop.trf.xlu2 }
 0x150   : > { %1900 = vmatmul.msk.f32.gmra.mxu0 %vm353_vm1, %v517_v54 }
 0x15e   : > { %v811_v58 = vpop.trf.xlu2 }
 0x161   : > { %v779_v33 = vpop.trf.xlu1 }
 0x162   : > { %1918 = vmatmul.msk.f32.vlgmr.msra.gmra.mxu1 %vm831_vm3, %v779_v33  ;;  %1951 = vmatmul.msk.f32.vlgmr.msrb.gmra.mxu2 %vm831_vm3, %v779_v33 }
 0x166   : > { %v812_v61 = vpop.trf.xlu2 }
 0x169   : > { %v780_v35 = vpop.trf.xlu1 }
 0x16a   : > { %1919 = vmatmul.msk.f32.gmra.mxu1 %vm831_vm3, %v780_v35  ;;  %1952 = vmatmul.msk.f32.gmra.mxu2 %vm831_vm3, %v780_v35 }
 0x16e   : > { %v813_v0 = vpop.trf.xlu2 }
 0x171   : > { %v781_v37 = vpop.trf.xlu1 }
 0x172   : > { %1920 = vmatmul.msk.f32.gmra.mxu1 %vm831_vm3, %v781_v37  ;;  %1953 = vmatmul.msk.f32.gmra.mxu2 %vm831_vm3, %v781_v37  ;;  %v2680_v37 = vpop.f32.mrf.mxu0 }
 0x173   : > { %3407 = vst [vmem:[#allocation11_spill] sm:$0xff] %v2680_v37 }
 0x176   : > { %v814_v4 = vpop.trf.xlu2 }
 0x179   : > { %v782_v39 = vpop.trf.xlu1 }
 0x17a   : > { %1921 = vmatmul.msk.f32.gmra.mxu1 %vm831_vm3, %v782_v39  ;;  %1954 = vmatmul.msk.f32.gmra.mxu2 %vm831_vm3, %v782_v39  ;;  %v2693_v44 = vpop.f32.mrf.mxu0 }
 0x17b   : > { %3408 = vst [vmem:[#allocation12_spill] sm:$0xff] %v2693_v44 }
 0x17e   : > { %v815_v8 = vpop.trf.xlu2 }
 0x181   : > { %v783_v41 = vpop.trf.xlu1 }
 0x182   : > { %1922 = vmatmul.msk.f32.gmra.mxu1 %vm831_vm3, %v783_v41  ;;  %1955 = vmatmul.msk.f32.gmra.mxu2 %vm831_vm3, %v783_v41  ;;  %v2708_v52 = vpop.f32.mrf.mxu0 }
 0x183   : > { %3409 = vst [vmem:[#allocation13_spill] sm:$0xff] %v2708_v52 }
 0x186   : > { %v816_v14 = vpop.trf.xlu2 }
 0x189   : > { %v784_v43 = vpop.trf.xlu1 }
 0x18a   : > { %1923 = vmatmul.msk.f32.gmra.mxu1 %vm831_vm3, %v784_v43  ;;  %1956 = vmatmul.msk.f32.gmra.mxu2 %vm831_vm3, %v784_v43 }
 0x18e   : > { %v817_v22 = vpop.trf.xlu2 }
 0x191   : > { %v785_v45 = vpop.trf.xlu1 }
 0x192   : > { %1924 = vmatmul.msk.f32.gmra.mxu1 %vm831_vm3, %v785_v45  ;;  %1957 = vmatmul.msk.f32.gmra.mxu2 %vm831_vm3, %v785_v45 }
 0x196   : > { %v818_v30 = vpop.trf.xlu2 }
 0x199   : > { %v786_v47 = vpop.trf.xlu1 }
 0x19a   : > { %1925 = vmatmul.msk.f32.gmra.mxu1 %vm831_vm3, %v786_v47  ;;  %1958 = vmatmul.msk.f32.gmra.mxu2 %vm831_vm3, %v786_v47 }
 0x19e   : > { %v819_v36 = vpop.trf.xlu2 }
 0x1a1   : > { %v787_v49 = vpop.trf.xlu1 }
 0x1a2   : > { %1926 = vmatmul.msk.f32.gmra.mxu1 %vm831_vm3, %v787_v49  ;;  %1959 = vmatmul.msk.f32.gmra.mxu2 %vm831_vm3, %v787_v49 }
 0x1a6   : > { %v820_v43 = vpop.trf.xlu2 }
 0x1a9   : > { %v788_v51 = vpop.trf.xlu1 }
 0x1aa   : > { %1927 = vmatmul.msk.f32.gmra.mxu1 %vm831_vm3, %v788_v51  ;;  %1960 = vmatmul.msk.f32.gmra.mxu2 %vm831_vm3, %v788_v51 }
 0x1ae   : > { %v821_v51 = vpop.trf.xlu2 }
 0x1b1   : > { %v789_v53 = vpop.trf.xlu1 }
 0x1b2   : > { %1928 = vmatmul.msk.f32.gmra.mxu1 %vm831_vm3, %v789_v53  ;;  %1961 = vmatmul.msk.f32.gmra.mxu2 %vm831_vm3, %v789_v53 }
 0x1b9   : > { %v790_v55 = vpop.trf.xlu1 }
 0x1ba   : > { %1929 = vmatmul.msk.f32.gmra.mxu1 %vm831_vm3, %v790_v55  ;;  %1962 = vmatmul.msk.f32.gmra.mxu2 %vm831_vm3, %v790_v55 }
 0x1c1   : > { %v791_v56 = vpop.trf.xlu1 }
 0x1c2   : > { %1930 = vmatmul.msk.f32.gmra.mxu1 %vm831_vm3, %v791_v56  ;;  %1963 = vmatmul.msk.f32.gmra.mxu2 %vm831_vm3, %v791_v56 }
 0x1c9   : > { %v792_v57 = vpop.trf.xlu1 }
 0x1ca   : > { %1931 = vmatmul.msk.f32.gmra.mxu1 %vm831_vm3, %v792_v57  ;;  %1964 = vmatmul.msk.f32.gmra.mxu2 %vm831_vm3, %v792_v57 }
 0x1d1   : > { %v793_v59 = vpop.trf.xlu1 }
 0x1d2   : > { %1932 = vmatmul.msk.f32.gmra.mxu1 %vm831_vm3, %v793_v59  ;;  %1965 = vmatmul.msk.f32.gmra.mxu2 %vm831_vm3, %v793_v59  ;;  %v2719_v59 = vpop.f32.mrf.mxu0 }
 0x1d3   : > { %3410 = vst [vmem:[#allocation14_spill] sm:$0xff] %v2719_v59 }
 0x1d9   : > { %v794_v60 = vpop.trf.xlu1 }
 0x1da   : > { %1933 = vmatmul.msk.f32.gmra.mxu1 %vm831_vm3, %v794_v60  ;;  %1966 = vmatmul.msk.f32.gmra.mxu2 %vm831_vm3, %v794_v60 }
 0x1df   : > { %v2612_v62 = vpop.f32.mrf.mxu1 }
 0x1e1   : > { %v534_v63 = vpop.trf.xlu1 }
 0x1e2   : > { %1901 = vmatmul.msk.f32.gmra.mxu0 %vm353_vm1, %v534_v63  ;;  %1967 = vmatmul.msk.f32.gmra.mxu2 %vm831_vm3, %v811_v58 }
 0x1e3   : > { %1934 = vmatmul.msk.f32.gmra.mxu1 %vm831_vm3, %v811_v58  ;;  %v822_v58 = vpop.trf.xlu2 }
 0x1e5   : > { %v2617_v1 = vpop.f32.mrf.mxu2 }
 0x1e6   : > { %v1159_v20 = vmax.f32 %v2612_v62, %v2617_v1 }
 0x1e7   : > { %v2619_v2 = vpop.f32.mrf.mxu1 }
 0x1e9   : > { %v535_v3 = vpop.trf.xlu1 }
 0x1ea   : > { %1902 = vmatmul.msk.f32.gmra.mxu0 %vm353_vm1, %v535_v3  ;;  %1968 = vmatmul.msk.f32.gmra.mxu2 %vm831_vm3, %v812_v61 }
 0x1eb   : > { %1935 = vmatmul.msk.f32.gmra.mxu1 %vm831_vm3, %v812_v61 }
 0x1ed   : > { %v2624_v5 = vpop.f32.mrf.mxu2 }
 0x1ee   : > { %v1162_v15 = vmax.f32 %v2619_v2, %v2624_v5 }
 0x1ef   : > { %v2626_v6 = vpop.f32.mrf.mxu1 }
 0x1f1   : > { %v536_v7 = vpop.trf.xlu1 }
 0x1f2   : > { %1903 = vmatmul.msk.f32.gmra.mxu0 %vm353_vm1, %v536_v7  ;;  %1969 = vmatmul.msk.f32.gmra.mxu2 %vm831_vm3, %v813_v0 }
 0x1f3   : > { %1936 = vmatmul.msk.f32.gmra.mxu1 %vm831_vm3, %v813_v0 }
 0x1f5   : > { %v2631_v9 = vpop.f32.mrf.mxu2 }
 0x1f6   : > { %v1165_v10 = vmax.f32 %v2626_v6, %v2631_v9 }
 0x1f7   : > { %v2635_v11 = vpop.f32.mrf.mxu1 }
 0x1f8   : > { %1166 = vmax.xlane.f32.xlu0 %v1165_v10 }
 0x1f9   : > { %v537_v12 = vpop.trf.xlu1 }
 0x1fa   : > { %1904 = vmatmul.msk.f32.gmra.mxu0 %vm353_vm1, %v537_v12  ;;  %1970 = vmatmul.msk.f32.gmra.mxu2 %vm831_vm3, %v814_v4 }
 0x1fb   : > { %1937 = vmatmul.msk.f32.gmra.mxu1 %vm831_vm3, %v814_v4 }
 0x1fd   : > { %v2640_v13 = vpop.f32.mrf.mxu2 }
 0x1fe   : > { %v1168_v16 = vmax.f32 %v2635_v11, %v2640_v13 }
 0x1ff   : > { %v2646_v17 = vpop.f32.mrf.mxu1 }
 0x200   : > { %1163 = vmax.xlane.f32.xlu0 %v1162_v15  ;;  %1169 = vmax.xlane.f32.xlu2 %v1168_v16 }
 0x201   : > { %v538_v18 = vpop.trf.xlu1 }
 0x202   : > { %1905 = vmatmul.msk.f32.gmra.mxu0 %vm353_vm1, %v538_v18  ;;  %1971 = vmatmul.msk.f32.gmra.mxu2 %vm831_vm3, %v815_v8 }
 0x203   : > { %1938 = vmatmul.msk.f32.gmra.mxu1 %vm831_vm3, %v815_v8 }
 0x205   : > { %v2651_v19 = vpop.f32.mrf.mxu2 }
 0x206   : > { %v1171_v31 = vmax.f32 %v2646_v17, %v2651_v19 }
 0x207   : > { %v2655_v21 = vpop.f32.mrf.mxu1 }
 0x208   : > { %1160 = vmax.xlane.f32.xlu0 %v1159_v20 }
 0x209   : > { %v539_v23 = vpop.trf.xlu1 }
 0x20a   : > { %1906 = vmatmul.msk.f32.gmra.mxu0 %vm353_vm1, %v539_v23  ;;  %1972 = vmatmul.msk.f32.gmra.mxu2 %vm831_vm3, %v816_v14 }
 0x20b   : > { %1939 = vmatmul.msk.f32.gmra.mxu1 %vm831_vm3, %v816_v14 }
 0x20d   : > { %v2660_v24 = vpop.f32.mrf.mxu2 }
 0x20e   : > { %v1174_v27 = vmax.f32 %v2655_v21, %v2660_v24 }
 0x20f   : > { %v2664_v28 = vpop.f32.mrf.mxu1 }
 0x210   : > { %1175 = vmax.xlane.f32.xlu0 %v1174_v27 }
 0x211   : > { %v540_v29 = vpop.trf.xlu1 }
 0x212   : > { %1907 = vmatmul.msk.f32.gmra.mxu0 %vm353_vm1, %v540_v29  ;;  %1973 = vmatmul.msk.f32.gmra.mxu2 %vm831_vm3, %v817_v22 }
 0x213   : > { %1940 = vmatmul.msk.f32.gmra.mxu1 %vm831_vm3, %v817_v22  ;;  %v823_v22 = vpop.trf.xlu2 }
 0x215   : > { %v2671_v32 = vpop.f32.mrf.mxu2  ;;  %1172 = vmax.xlane.f32.xlu1 %v1171_v31 }
 0x216   : > { %v1177_v33 = vmax.f32 %v2664_v28, %v2671_v32 }
 0x217   : > { %v2675_v34 = vpop.f32.mrf.mxu1 }
 0x218   : > { %1178 = vmax.xlane.f32.xlu0 %v1177_v33 }
 0x219   : > { %v541_v35 = vpop.trf.xlu1 }
 0x21a   : > { %1908 = vmatmul.msk.f32.gmra.mxu0 %vm353_vm1, %v541_v35  ;;  %1974 = vmatmul.msk.f32.gmra.mxu2 %vm831_vm3, %v818_v30 }
 0x21b   : > { %1941 = vmatmul.msk.f32.gmra.mxu1 %vm831_vm3, %v818_v30  ;;  %v824_v30 = vpop.trf.xlu2 }
 0x21d   : > { %v2682_v38 = vpop.f32.mrf.mxu2 }
 0x21e   : > { %v1180_v39 = vmax.f32 %v2675_v34, %v2682_v38 }
 0x21f   : > { %v2686_v40 = vpop.f32.mrf.mxu1 }
 0x220   : > { %1181 = vmax.xlane.f32.xlu0 %v1180_v39 }
 0x221   : > { %v542_v41 = vpop.trf.xlu1 }
 0x222   : > { %1909 = vmatmul.msk.f32.gmra.mxu0 %vm353_vm1, %v542_v41  ;;  %1975 = vmatmul.msk.f32.gmra.mxu2 %vm831_vm3, %v819_v36 }
 0x223   : > { %1942 = vmatmul.msk.f32.gmra.mxu1 %vm831_vm3, %v819_v36 }
 0x225   : > { %v2691_v42 = vpop.f32.mrf.mxu2 }
 0x226   : > { %v1183_v45 = vmax.f32 %v2686_v40, %v2691_v42 }
 0x227   : > { %v2697_v46 = vpop.f32.mrf.mxu1 }
 0x228   : > { %1184 = vmax.xlane.f32.xlu0 %v1183_v45 }
 0x229   : > { %v543_v47 = vpop.trf.xlu1 }
 0x22a   : > { %1910 = vmatmul.msk.f32.gmra.mxu0 %vm353_vm1, %v543_v47  ;;  %1976 = vmatmul.msk.f32.gmra.mxu2 %vm831_vm3, %v820_v43 }
 0x22b   : > { %1943 = vmatmul.msk.f32.gmra.mxu1 %vm831_vm3, %v820_v43  ;;  %v825_v43 = vpop.trf.xlu2 }
 0x22d   : > { %v2702_v48 = vpop.f32.mrf.mxu2 }
 0x22e   : > { %v1186_v49 = vmax.f32 %v2697_v46, %v2702_v48 }
 0x22f   : > { %v2706_v50 = vpop.f32.mrf.mxu1 }
 0x230   : > { %1187 = vmax.xlane.f32.xlu0 %v1186_v49 }
 0x231   : > { %v544_v53 = vpop.trf.xlu1 }
 0x232   : > { %1911 = vmatmul.msk.f32.gmra.mxu0 %vm353_vm1, %v544_v53  ;;  %1977 = vmatmul.msk.f32.gmra.mxu2 %vm831_vm3, %v821_v51 }
 0x233   : > { %1944 = vmatmul.msk.f32.gmra.mxu1 %vm831_vm3, %v821_v51  ;;  %v826_v45 = vpop.trf.xlu2 }
 0x235   : > { %v2713_v54 = vpop.f32.mrf.mxu2 }
 0x236   : > { %v1189_v55 = vmax.f32 %v2706_v50, %v2713_v54 }
 0x237   : > { %v2717_v56 = vpop.f32.mrf.mxu1 }
 0x238   : > { %1190 = vmax.xlane.f32.xlu0 %v1189_v55 }
 0x239   : > { %v545_v57 = vpop.trf.xlu1 }
 0x23a   : > { %1912 = vmatmul.msk.f32.gmra.mxu0 %vm353_vm1, %v545_v57  ;;  %1978 = vmatmul.msk.f32.gmra.mxu2 %vm831_vm3, %v822_v58 }
 0x23b   : > { %1945 = vmatmul.msk.f32.gmra.mxu1 %vm831_vm3, %v822_v58 }
 0x23d   : > { %v2724_v60 = vpop.f32.mrf.mxu2 }
 0x23e   : > { %v1192_v61 = vmax.f32 %v2717_v56, %v2724_v60 }
 0x23f   : > { %v2728_v63 = vpop.f32.mrf.mxu1 }
 0x240   : > { %1193 = vmax.xlane.f32.xlu0 %v1192_v61 }
 0x241   : > { %v546_v0 = vpop.trf.xlu1 }
 0x242   : > { %1913 = vmatmul.msk.f32.vlgmr.msra.gmra.mxu3 %vm353_vm1, %v546_v0 }
 0x243   : > { %1991 = vmatpush.msk.msra.mxu3 %vm405_vm2, %v2551_v25 }
 0x245   : > { %v2733_v3 = vpop.f32.mrf.mxu2 }
 0x246   : > { %v1195_v4 = vmax.f32 %v2728_v63, %v2733_v3 }
 0x247   : > { %v2737_v7 = vpop.f32.mrf.mxu1 }
 0x248   : > { %1196 = vmax.xlane.f32.xlu0 %v1195_v4 }
 0x249   : > { %v547_v8 = vpop.trf.xlu1 }
 0x24a   : > { %1914 = vmatmul.msk.f32.gmra.mxu3 %vm353_vm1, %v547_v8 }
 0x24d   : > { %v2740_v10 = vpop.f32.mrf.mxu2 }
 0x24e   : > { %v1198_v12 = vmax.f32 %v2737_v7, %v2740_v10 }
 0x24f   : > { %v992_v14 = vpop.f32.mrf.mxu1 }
 0x250   : > { %1199 = vmax.xlane.f32.xlu0 %v1198_v12 }
 0x251   : > { %v548_v15 = vpop.trf.xlu1 }
 0x252   : > { %1915 = vmatmul.msk.f32.gmra.mxu3 %vm353_vm1, %v548_v15 }
 0x255   : > { %v2745_v25 = vpop.f32.mrf.mxu2 }
 0x256   : > { %v1201_v16 = vmax.f32 %v992_v14, %v2745_v25 }
 0x257   : > { %v995_v18 = vpop.f32.mrf.mxu1 }
 0x258   : > { %1202 = vmax.xlane.f32.xlu0 %v1201_v16 }
 0x259   : > { %v549_v20 = vpop.trf.xlu1 }
 0x25a   : > { %1916 = vmatmul.msk.f32.gmra.mxu3 %vm353_vm1, %v549_v20 }
 0x25d   : > { %v2749_v23 = vpop.f32.mrf.mxu2 }
 0x25e   : > { %v1204_v27 = vmax.f32 %v995_v18, %v2749_v23 }
 0x260   : > { %1205 = vmax.xlane.f32.xlu0 %v1204_v27  ;;  %v2752_v29 = vpop.f32.mrf.mxu1 }
 0x262   : > { %1946 = vmatmul.msk.f32.vlgmr.msra.gmra.mxu3 %vm831_vm3, %v823_v22 }
 0x263   : > { %1992 = vmatpush.msk.msra.mxu3 %vm405_vm2, %v2553_v26 }
 0x265   : > { %v2757_v31 = vpop.f32.mrf.mxu2 }
 0x266   : > { %v1207_v33 = vmax.f32 %v2752_v29, %v2757_v31 }
 0x268   : > { %1208 = vmax.xlane.f32.xlu0 %v1207_v33  ;;  %v2764_v36 = vpop.f32.mrf.mxu1 }
 0x26a   : > { %1947 = vmatmul.msk.f32.gmra.mxu3 %vm831_vm3, %v824_v30 }
 0x26b   : > { %v2762_v35 = vpop.xlane.xlu0 %1166 }
 0x26d   : > { %v2766_v39 = vpop.f32.mrf.mxu2 }
 0x26e   : > { %v1210_v41 = vmax.f32 %v2764_v36, %v2766_v39 }
 0x270   : > { %1211 = vmax.xlane.f32.xlu0 %v1210_v41 }
 0x272   : > { %1948 = vmatmul.msk.f32.gmra.mxu3 %vm831_vm3, %v825_v43 }
 0x273   : > { %v2771_v26 = vpop.xlane.xlu0 %1163 }
 0x27a   : > { %1949 = vmatmul.msk.f32.gmra.mxu3 %vm831_vm3, %v826_v45 }
 0x27b   : > { %v2774_v47 = vpop.xlane.xlu0 %1160 }
 0x282   : > { %1979 = vmatmul.msk.f32.vlgmr.msra.gmra.mxu3 %vm831_vm3, %v823_v22 }
 0x283   : > { %v2777_v49 = vpop.xlane.xlu0 %1175 }
 0x28a   : > { %1980 = vmatmul.msk.f32.gmra.mxu3 %vm831_vm3, %v824_v30 }
 0x28b   : > { %v2780_v51 = vpop.xlane.xlu0 %1178 }
 0x292   : > { %1981 = vmatmul.msk.f32.gmra.mxu3 %vm831_vm3, %v825_v43 }
 0x293   : > { %v2783_v53 = vpop.xlane.xlu0 %1181 }
 0x29a   : > { %1982 = vmatmul.msk.f32.gmra.mxu3 %vm831_vm3, %v826_v45 }
 0x29b   : > { %v2786_v55 = vpop.xlane.xlu0 %1184 }
 0x2a3   : > { %v2788_v57 = vpop.xlane.xlu0 %1187 }
 0x2ab   : > { %v2790_v58 = vpop.xlane.xlu0 %1190 }
 0x2b3   : > { %v2792_v61 = vpop.xlane.xlu0 %1193 }
 0x2b4   : > { %v1277_v45 = vsub.f32 %v2717_v56, %v2792_v61 }
 0x2bb   : > { %v2794_v0 = vpop.xlane.xlu0 %1196 }
 0x2bc   : > { %v1279_v33 = vsub.f32 %v2728_v63, %v2794_v0 }
 0x2c3   : > { %v2796_v4 = vpop.xlane.xlu0 %1199 }
 0x2c4   : > { %v1281_v22 = vsub.f32 %v2737_v7, %v2796_v4  ;;  %v1273_v7 = vsub.f32 %v2697_v46, %v2788_v57 }
 0x2c5   : > { %v2798_v8 = vpop.f32.mrf.mxu3 }
 0x2c6   : > { %3411 = vst [vmem:[#allocation15_spill] sm:$0xff] %v2798_v8  ;;  %v1367_v8 = vmul.f32 1.442695, %v1279_v33 }
 0x2cb   : > { %v2800_v12 = vpop.xlane.xlu0 %1202 }
 0x2cc   : > { %v1283_v16 = vsub.f32 %v992_v14, %v2800_v12  ;;  %v1275_v14 = vsub.f32 %v2706_v50, %v2790_v58  ;;  %v1269_v50 = vsub.f32 %v2675_v34, %v2783_v53  ;;  %v1265_v34 = vsub.f32 %v2655_v21, %v2777_v49 }
 0x2cd   : > { %v2802_v15 = vpop.f32.mrf.mxu3 }
 0x2ce   : > { %3412 = vst [vmem:[#allocation16_spill] sm:$0xff] %v2802_v15  ;;  %v1375_v41 = vmul.f32 1.442695, %v1283_v16  ;;  %v1371_v15 = vmul.f32 1.442695, %v1281_v22  ;;  %v1271_v16 = vsub.f32 %v2686_v40, %v2786_v55  ;;  %v2836_v40 = vpop.xlane.xlu1 %1172 }
 0x2cf   : > { %v1359_v56 = vmul.f32 1.442695, %v1275_v14  ;;  %v1263_v14 = vsub.f32 %v2646_v17, %v2836_v40 }
 0x2d0   : > { %v1351_v33 = vmul.f32 1.442695, %v1271_v16  ;;  %v1339_v16 = vmul.f32 1.442695, %v1265_v34 }
 0x2d3   : > { %v2805_v20 = vpop.xlane.xlu0 %1205 }
 0x2d4   : > { %v1285_v27 = vsub.f32 %v995_v18, %v2805_v20  ;;  %v1363_v18 = vmul.f32 1.442695, %v1277_v45 }
 0x2d5   : > { %v2810_v30 = vpop.f32.mrf.mxu3 }
 0x2d6   : > { %3413 = vst [vmem:[#allocation17_spill] sm:$0xff] %v2810_v30  ;;  %v1379_v43 = vmul.f32 1.442695, %v1285_v27  ;;  %v1355_v27 = vmul.f32 1.442695, %v1273_v7 }
 0x2d8   : > { %2087 = vpow2.f32 %v1379_v43  ;;  %v2843_v43 = vpop.xlane.xlu2 %1169 }
 0x2d9   : > { %2089 = vpow2.f32 %v1375_v41  ;;  %v1347_v41 = vmul.f32 1.442695, %v1269_v50  ;;  %v1261_v21 = vsub.f32 %v2635_v11, %v2843_v43  ;;  %v1259_v50 = vsub.f32 %v2626_v6, %v2762_v35 }
 0x2da   : > { %2091 = vpow2.f32 %v1371_v15  ;;  %v1267_v15 = vsub.f32 %v2664_v28, %v2780_v51  ;;  %v1255_v6 = vsub.f32 %v2612_v62, %v2774_v47 }
 0x2db   : > { %2093 = vpow2.f32 %v1367_v8 }
 0x2dc   : > { %2095 = vpow2.f32 %v1363_v18  ;;  %v1343_v7 = vmul.f32 1.442695, %v1267_v15  ;;  %v1257_v15 = vsub.f32 %v2619_v2, %v2771_v26 }
 0x2dd   : > { %v2820_v30 = vpop.f32.mrf.mxu3  ;;  %2097 = vpow2.f32 %v1359_v56 }
 0x2de   : > { %3414 = vst [vmem:[#allocation18_spill] sm:$0xff] %v2820_v30  ;;  %v2822_v63 = vpop.eup %2087  ;;  %2099 = vpow2.f32 %v1355_v27  ;;  %v1335_v27 = vmul.f32 1.442695, %v1263_v14 }
 0x2df   : > { %1672 = vmatpush.msra.mxu3 %v2822_v63  ;;  %v2827_v22 = vpop.eup %2089  ;;  %2101 = vpow2.f32 %v1351_v33  ;;  %v1331_v33 = vmul.f32 1.442695, %v1261_v21  ;;  %v1319_v21 = vmul.f32 1.442695, %v1255_v6 }
 0x2e0   : > { %v2832_v46 = vpop.eup %2091  ;;  %2103 = vpow2.f32 %v1347_v41  ;;  %v1327_v41 = vmul.f32 1.442695, %v1259_v50 }
 0x2e1   : > { %1673 = vmatpush.msra.mxu3 %v2827_v22  ;;  %v2839_v8 = vpop.eup %2093  ;;  %2105 = vpow2.f32 %v1343_v7  ;;  %v1323_v7 = vmul.f32 1.442695, %v1257_v15 }
 0x2e2   : > { %v2848_v28 = vpop.eup %2095  ;;  %2107 = vpow2.f32 %v1339_v16 }
 0x2e3   : > { %1674 = vmatpush.msra.mxu3 %v2832_v46  ;;  %v2853_v18 = vpop.eup %2097  ;;  %2109 = vpow2.f32 %v1335_v27 }
 0x2e4   : > { %v2858_v56 = vpop.eup %2099  ;;  %2111 = vpow2.f32 %v1331_v33 }
 0x2e5   : > { %v2845_v45 = vpop.f32.mrf.mxu3  ;;  %1675 = vmatpush.msra.mxu3 %v2839_v8  ;;  %v2863_v17 = vpop.eup %2101  ;;  %2113 = vpow2.f32 %v1327_v41  ;;  %v1258_v41 = vsub.f32 %v2624_v5, %v2771_v26 }
 0x2e6   : > { %v2870_v34 = vpop.eup %2103  ;;  %2115 = vpow2.f32 %v1323_v7  ;;  %v1260_v7 = vsub.f32 %v2631_v9, %v2762_v35  ;;  %v1209_v9 = vpop.xlane.xlu0 %1208 }
 0x2e7   : > { %1676 = vmatpush.msra.mxu3 %v2848_v28  ;;  %v2875_v14 = vpop.eup %2105  ;;  %2117 = vpow2.f32 %v1319_v21  ;;  %v1325_v30 = vmul.f32 1.442695, %v1258_v41  ;;  %v2903_v35 = vpop.f32.mrf.mxu1 }
 0x2e8   : > { %v2878_v2 = vpop.eup %2107  ;;  %v1329_v44 = vmul.f32 1.442695, %v1260_v7  ;;  %v1256_v7 = vsub.f32 %v2617_v1, %v2774_v47 }
 0x2e9   : > { %1677 = vmatpush.msra.mxu3 %v2853_v18  ;;  %v2881_v16 = vpop.eup %2109  ;;  %2119 = vpow2.f32 %v1325_v30  ;;  %v2905_v30 = vpop.f32.mrf.mxu2 }
 0x2ea   : > { %v2112_v62 = vpop.eup %2111  ;;  %2121 = vpow2.f32 %v1329_v44  ;;  %v1287_v44 = vsub.f32 %v2752_v29, %v1209_v9 }
 0x2eb   : > { %1678 = vmatpush.msra.mxu3 %v2858_v56  ;;  %v2114_v27 = vpop.eup %2113 }
 0x2ec   : > { %v2116_v15 = vpop.eup %2115 }
 0x2ed   : > { %v2867_v11 = vpop.f32.mrf.mxu3  ;;  %1679 = vmatpush.msra.mxu3 %v2863_v17  ;;  %v2118_v33 = vpop.eup %2117 }
 0x2ee   : > { %3415 = vst [vmem:[#allocation19_spill] sm:$0xff] %v2867_v11 }
 0x2ef   : > { %1680 = vmatpush.msra.mxu3 %v2870_v34  ;;  %v2896_v52 = vpop.eup %2119  ;;  %v2920_v29 = vpop.f32.mrf.mxu1 }
 0x2f0   : > { %3417 = vst [vmem:[#allocation21_spill] sm:$0xff] %v2896_v52  ;;  %v1450_v26 = vadd.f32 %v2896_v52, %v2116_v15  ;;  %v2907_v41 = vpop.eup %2121  ;;  %v1321_v52 = vmul.f32 1.442695, %v1256_v7  ;;  %v1264_v7 = vsub.f32 %v2651_v19, %v2836_v40  ;;  %v1266_v40 = vsub.f32 %v2660_v24, %v2777_v49 }
 0x2f1   : > { %1681 = vmatpush.msra.mxu3 %v2875_v14  ;;  %3419 = vst [vmem:[#allocation23_spill] sm:$0xff] %v2907_v41 }
 0x2f2   : > { %2123 = vpow2.f32 %v1321_v52 }
 0x2f3   : > { %1682 = vmatpush.msra.mxu3 %v2878_v2 }
 0x2f5   : > { %v2883_v50 = vpop.f32.mrf.mxu3  ;;  %1683 = vmatpush.msra.mxu3 %v2881_v16 }
 0x2f7   : > { %1684 = vmatpush.msra.mxu3 %v2112_v62 }
 0x2f8   : > { %v2932_v52 = vpop.eup %2123 }
 0x2f9   : > { %1685 = vmatpush.msra.mxu3 %v2114_v27  ;;  %3420 = vst [vmem:[#allocation24_spill] sm:$0xff] %v2932_v52 }
 0x2fb   : > { %1686 = vmatpush.msra.mxu3 %v2116_v15  ;;  %v1262_v15 = vsub.f32 %v2640_v13, %v2843_v43 }
 0x2fd   : > { %v2888_v6 = vpop.f32.mrf.mxu3  ;;  %1687 = vmatpush.msra.mxu3 %v2118_v33  ;;  %v1333_v1 = vmul.f32 1.442695, %v1262_v15 }
 0x305   : > { %v2892_v37 = vpop.f32.mrf.mxu3 }
 0x306   : > { %3416 = vst [vmem:[#allocation20_spill] sm:$0xff] %v2892_v37  ;;  %v1243_v21 = vmax.f32 %v2845_v45, %v2892_v37 }
 0x308   : > { %1244 = vmax.xlane.f32.xlu0 %v1243_v21  ;;  %v1288_v21 = vsub.f32 %v2757_v31, %v1209_v9  ;;  %v2922_v31 = vpop.f32.mrf.mxu2 }
 0x30d   : > { %v2898_v59 = vpop.f32.mrf.mxu3 }
 0x30e   : > { %3418 = vst [vmem:[#allocation22_spill] sm:$0xff] %v2898_v59  ;;  %v1246_v5 = vmax.f32 %v2867_v11, %v2898_v59  ;;  %v1383_v59 = vmul.f32 1.442695, %v1287_v44  ;;  %v1385_v11 = vmul.f32 1.442695, %v1288_v21  ;;  %v1447_v44 = vadd.f32 %v2932_v52, %v2118_v33 }
 0x30f   : > { %v1341_v33 = vmul.f32 1.442695, %v1266_v40  ;;  %v1270_v40 = vsub.f32 %v2682_v38, %v2783_v53 }
 0x310   : > { %1247 = vmax.xlane.f32.xlu1 %v1246_v5  ;;  %1451 = vadd.xlane.f32.xlu0 %v1450_v26  ;;  %v1453_v5 = vadd.f32 %v2907_v41, %v2114_v27  ;;  %v1213_v26 = vmax.f32 %v2903_v35, %v2905_v30  ;;  %2125 = vpow2.f32 %v1383_v59  ;;  %v1216_v27 = vmax.f32 %v2920_v29, %v2922_v31 }
 0x311   : > { %2127 = vpow2.f32 %v1385_v11 }
 0x312   : > { %2129 = vpow2.f32 %v1333_v1  ;;  %v2948_v1 = vpop.f32.mrf.mxu2 }
 0x315   : > { %v2913_v37 = vpop.f32.mrf.mxu3 }
 0x316   : > { %v1249_v43 = vmax.f32 %v2883_v50, %v2913_v37  ;;  %v2934_v9 = vpop.eup %2125 }
 0x317   : > { %v2936_v59 = vpop.eup %2127 }
 0x318   : > { %1454 = vadd.xlane.f32.xlu1 %v1453_v5  ;;  %1214 = vmax.xlane.f32.xlu0 %v1213_v26  ;;  %3421 = vst [vmem:[#allocation25_spill] sm:$0xff] %v2936_v59  ;;  %v2938_v11 = vpop.eup %2129  ;;  %v1495_v21 = vadd.f32 %v2936_v59, %v2934_v9  ;;  %v1337_v5 = vmul.f32 1.442695, %v1264_v7  ;;  %v2946_v26 = vpop.f32.mrf.mxu1 }
 0x319   : > { %v1456_v15 = vadd.f32 %v2938_v11, %v2112_v62 }
 0x31a   : > { %2131 = vpow2.f32 %v1337_v5 }
 0x31b   : > { %2133 = vpow2.f32 %v1341_v33 }
 0x31d   : > { %v2924_v47 = vpop.f32.mrf.mxu3 }
 0x31e   : > { %v1252_v13 = vmax.f32 %v2888_v6, %v2924_v47 }
 0x320   : > { %1253 = vmax.xlane.f32.xlu2 %v1252_v13  ;;  %1250 = vmax.xlane.f32.xlu1 %v1249_v43  ;;  %v1219_v13 = vmax.f32 %v2946_v26, %v2948_v1  ;;  %v2952_v19 = vpop.eup %2131  ;;  %v2958_v43 = vpop.f32.mrf.mxu1 }
 0x321   : > { %1217 = vmax.xlane.f32.xlu0 %v1216_v27  ;;  %v1459_v62 = vadd.f32 %v2952_v19, %v2881_v16  ;;  %v2960_v27 = vpop.f32.mrf.mxu2 }
 0x322   : > { %v1222_v7 = vmax.f32 %v2958_v43, %v2960_v27 }
 0x328   : > { %1448 = vadd.xlane.f32.xlu1 %v1447_v44  ;;  %1496 = vadd.xlane.f32.xlu2 %v1495_v21  ;;  %v2964_v44 = vpop.eup %2133  ;;  %v1268_v21 = vsub.f32 %v2671_v32, %v2780_v51  ;;  %v2970_v16 = vpop.f32.mrf.mxu1  ;;  %v1349_v51 = vmul.f32 1.442695, %v1270_v40 }
 0x329   : > { %1457 = vadd.xlane.f32.xlu0 %v1456_v15  ;;  %v1462_v24 = vadd.f32 %v2964_v44, %v2878_v2  ;;  %v2972_v15 = vpop.f32.mrf.mxu2 }
 0x32a   : > { %v1345_v49 = vmul.f32 1.442695, %v1268_v21  ;;  %v1225_v5 = vmax.f32 %v2970_v16, %v2972_v15  ;;  %v1272_v21 = vsub.f32 %v2691_v42, %v2786_v55  ;;  %v1274_v42 = vsub.f32 %v2702_v48, %v2788_v57 }
 0x32b   : > { %v1276_v48 = vsub.f32 %v2713_v54, %v2790_v58 }
 0x32c   : > { %2135 = vpow2.f32 %v1345_v49  ;;  %v1353_v53 = vmul.f32 1.442695, %v1272_v21 }
 0x32d   : > { %2137 = vpow2.f32 %v1349_v51 }
 0x32e   : > { %2139 = vpow2.f32 %v1353_v53 }
 0x330   : > { %v2982_v2 = vpop.f32.mrf.mxu1 }
 0x331   : > { %1220 = vmax.xlane.f32.xlu0 %v1219_v13 }
 0x332   : > { %v2976_v13 = vpop.eup %2135 }
 0x333   : > { %v1465_v32 = vadd.f32 %v2976_v13, %v2875_v14 }
 0x338   : > { %v2994_v14 = vpop.f32.mrf.mxu1 }
 0x339   : > { %1460 = vadd.xlane.f32.xlu0 %v1459_v62  ;;  %v2984_v62 = vpop.f32.mrf.mxu2 }
 0x33a   : > { %v1228_v33 = vmax.f32 %v2982_v2, %v2984_v62 }
 0x340   : > { %v3010_v51 = vpop.f32.mrf.mxu1 }
 0x341   : > { %1223 = vmax.xlane.f32.xlu0 %v1222_v7  ;;  %v2988_v7 = vpop.eup %2137 }
 0x342   : > { %v1468_v38 = vadd.f32 %v2988_v7, %v2870_v34  ;;  %v3002_v40 = vpop.eup %2139  ;;  %v1357_v34 = vmul.f32 1.442695, %v1274_v42 }
 0x343   : > { %v1471_v55 = vadd.f32 %v3002_v40, %v2863_v17  ;;  %v1361_v17 = vmul.f32 1.442695, %v1276_v48 }
 0x344   : > { %2141 = vpow2.f32 %v1357_v34 }
 0x345   : > { %2143 = vpow2.f32 %v1361_v17 }
 0x348   : > { %v3024_v42 = vpop.f32.mrf.mxu1 }
 0x349   : > { %1463 = vadd.xlane.f32.xlu0 %v1462_v24  ;;  %v2996_v24 = vpop.f32.mrf.mxu2 }
 0x34a   : > { %v1231_v49 = vmax.f32 %v2994_v14, %v2996_v24  ;;  %v3018_v53 = vpop.eup %2141 }
 0x34b   : > { %v1474_v57 = vadd.f32 %v3018_v53, %v2858_v56  ;;  %v3032_v58 = vpop.eup %2143 }
 0x34c   : > { %v1477_v17 = vadd.f32 %v3032_v58, %v2853_v18 }
 0x351   : > { %1226 = vmax.xlane.f32.xlu0 %v1225_v5  ;;  %v3000_v5 = vpop.xlane.xlu0 %1211 }
 0x359   : > { %1466 = vadd.xlane.f32.xlu0 %v1465_v32 }
 0x361   : > { %1229 = vmax.xlane.f32.xlu0 %v1228_v33  ;;  %v3012_v33 = vpop.f32.mrf.mxu2 }
 0x362   : > { %v1234_v21 = vmax.f32 %v3010_v51, %v3012_v33 }
 0x369   : > { %1469 = vadd.xlane.f32.xlu0 %v1468_v38 }
 0x371   : > { %1232 = vmax.xlane.f32.xlu0 %v1231_v49 }
 0x379   : > { %1472 = vadd.xlane.f32.xlu0 %v1471_v55  ;;  %v3026_v55 = vpop.f32.mrf.mxu2 }
 0x37a   : > { %v1237_v54 = vmax.f32 %v3024_v42, %v3026_v55 }
 0x37b   : > { %v3008_v32 = vpop.xlane.xlu0 %1244 }
 0x381   : > { %1235 = vmax.xlane.f32.xlu0 %v1234_v21 }
 0x383   : > { %v3016_v38 = vpop.xlane.xlu0 %1451 }
 0x389   : > { %1475 = vadd.xlane.f32.xlu0 %v1474_v57 }
 0x38b   : > { %v1215_v49 = vpop.xlane.xlu0 %1214 }
 0x38c   : > { %v1291_v34 = vsub.f32 %v2903_v35, %v1215_v49  ;;  %v1292_v21 = vsub.f32 %v2905_v30, %v1215_v49  ;;  %v1278_v35 = vsub.f32 %v2724_v60, %v2792_v61  ;;  %v1280_v60 = vsub.f32 %v2733_v3, %v2794_v0 }
 0x38d   : > { %v1282_v3 = vsub.f32 %v2740_v10, %v2796_v4  ;;  %v3079_v10 = vld [vmem:[%s3379_s6] ss:$0 sm:$0xff]  ;;  %v678_v4 = vpop.f32.mrf.mxu0 }
 0x38e   : > { %v1391_v59 = vmul.f32 1.442695, %v1291_v34  ;;  %v1393_v52 = vmul.f32 1.442695, %v1292_v21  ;;  %v1365_v34 = vmul.f32 1.442695, %v1278_v35 }
 0x390   : > { %2145 = vpow2.f32 %v1391_v59 }
 0x391   : > { %2147 = vpow2.f32 %v1393_v52  ;;  %1238 = vmax.xlane.f32.xlu0 %v1237_v54  ;;  %v1369_v54 = vmul.f32 1.442695, %v1280_v60 }
 0x394   : > { %v1218_v56 = vpop.xlane.xlu0 %1217 }
 0x395   : > { %v1293_v48 = vsub.f32 %v2920_v29, %v1218_v56  ;;  %v1294_v57 = vsub.f32 %v2922_v31, %v1218_v56  ;;  %v3046_v29 = vpop.f32.mrf.mxu1  ;;  %v3048_v31 = vpop.f32.mrf.mxu2 }
 0x396   : > { %v3036_v41 = vpop.eup %2145  ;;  %v1240_v61 = vmax.f32 %v3046_v29, %v3048_v31 }
 0x397   : > { %v3040_v30 = vpop.eup %2147  ;;  %v1395_v59 = vmul.f32 1.442695, %v1293_v48  ;;  %v1397_v49 = vmul.f32 1.442695, %v1294_v57 }
 0x398   : > { %3422 = vst [vmem:[#allocation26_spill] sm:$0xff] %v3040_v30  ;;  %v1501_v52 = vadd.f32 %v3040_v30, %v3036_v41 }
 0x399   : > { %1478 = vadd.xlane.f32.xlu0 %v1477_v17  ;;  %2149 = vpow2.f32 %v1395_v59  ;;  %v1373_v17 = vmul.f32 1.442695, %v1282_v3 }
 0x39a   : > { %1502 = vadd.xlane.f32.xlu1 %v1501_v52  ;;  %2151 = vpow2.f32 %v1397_v49  ;;  %v1284_v49 = vsub.f32 %v2745_v25, %v2800_v12 }
 0x39b   : > { %2153 = vpow2.f32 %v1365_v34 }
 0x39c   : > { %v3050_v21 = vpop.xlane.xlu0 %1457  ;;  %2155 = vpow2.f32 %v1369_v54  ;;  %v1377_v60 = vmul.f32 1.442695, %v1284_v49 }
 0x39f   : > { %v3056_v18 = vpop.eup %2149 }
 0x3a0   : > { %v3058_v56 = vpop.eup %2151 }
 0x3a1   : > { %1241 = vmax.xlane.f32.xlu0 %v1240_v61  ;;  %3423 = vst [vmem:[#allocation27_spill] sm:$0xff] %v3058_v56  ;;  %v3060_v48 = vpop.eup %2153  ;;  %v1504_v57 = vadd.f32 %v3058_v56, %v3056_v18 }
 0x3a2   : > { %v1480_v0 = vadd.f32 %v3060_v48, %v2848_v28  ;;  %v3070_v59 = vpop.eup %2155  ;;  %v679_v28 = vadd.f32 %v3079_v10, %v678_v4 }
 0x3a3   : > { %1505 = vadd.xlane.f32.xlu2 %v1504_v57  ;;  %v1483_v34 = vadd.f32 %v3070_v59, %v2839_v8  ;;  %v1286_v8 = vsub.f32 %v2749_v23, %v2805_v20  ;;  %v1290_v23 = vsub.f32 %v2766_v39, %v3000_v5 }
 0x3a4   : > { %v3064_v35 = vpop.xlane.xlu0 %1220 }
 0x3a5   : > { %v1381_v49 = vmul.f32 1.442695, %v1286_v8  ;;  %v1295_v39 = vsub.f32 %v2946_v26, %v3064_v35 }
 0x3a9   : > { %1481 = vadd.xlane.f32.xlu0 %v1480_v0 }
 0x3ac   : > { %v1461_v52 = vpop.xlane.xlu0 %1460 }
 0x3ad   : > { %2157 = vrcp.f32 %v1461_v52 }
 0x3ae   : > { %2159 = vpow2.f32 %v1373_v17 }
 0x3af   : > { %2161 = vpow2.f32 %v1377_v60 }
 0x3b1   : > { %1484 = vadd.xlane.f32.xlu0 %v1483_v34 }
 0x3b3   : > { %v2158_v61 = vpop.eup %2157 }
 0x3b4   : > { %v3082_v54 = vpop.eup %2159  ;;  %v1224_v57 = vpop.xlane.xlu0 %1223  ;;  %v3084_v3 = vmul.f32 %v2158_v61, %v679_v28 }
 0x3b5   : > { %v1297_v25 = vsub.f32 %v2958_v43, %v1224_v57  ;;  %v1298_v12 = vsub.f32 %v2960_v27, %v1224_v57  ;;  %v1486_v52 = vadd.f32 %v3082_v54, %v2832_v46  ;;  %v3092_v34 = vpop.eup %2161  ;;  %v681_v28 = vpop.f32.mrf.mxu0  ;;  %v1289_v43 = vsub.f32 %v2764_v36, %v3000_v5 }
 0x3b6   : > { %v1489_v46 = vadd.f32 %v3092_v34, %v2827_v22  ;;  %v682_v57 = vadd.f32 %v3079_v10, %v681_v28  ;;  %v1389_v36 = vmul.f32 1.442695, %v1290_v23 }
 0x3b7   : > { %v1403_v0 = vmul.f32 1.442695, %v1297_v25  ;;  %v1405_v17 = vmul.f32 1.442695, %v1298_v12  ;;  %v1387_v60 = vmul.f32 1.442695, %v1289_v43 }
 0x3b8   : > { %v1399_v43 = vmul.f32 1.442695, %v1295_v39 }
 0x3b9   : > { %2163 = vpow2.f32 %v1403_v0  ;;  %1487 = vadd.xlane.f32.xlu0 %v1486_v52 }
 0x3ba   : > { %2165 = vpow2.f32 %v1405_v17  ;;  %v1296_v17 = vsub.f32 %v2948_v1, %v3064_v35 }
 0x3bc   : > { %v1464_v4 = vpop.xlane.xlu0 %1463  ;;  %v1401_v26 = vmul.f32 1.442695, %v1296_v17 }
 0x3bd   : > { %2167 = vrcp.f32 %v1464_v4  ;;  %v684_v52 = vpop.f32.mrf.mxu0 }
 0x3be   : > { %2169 = vpow2.f32 %v1381_v49 }
 0x3bf   : > { %v3098_v20 = vpop.eup %2163  ;;  %2171 = vpow2.f32 %v1387_v60 }
 0x3c0   : > { %v3102_v27 = vpop.eup %2165  ;;  %2173 = vpow2.f32 %v1389_v36 }
 0x3c1   : > { %3424 = vst [vmem:[#allocation28_spill] sm:$0xff] %v3102_v27  ;;  %1490 = vadd.xlane.f32.xlu0 %v1489_v46  ;;  %v1510_v61 = vadd.f32 %v3102_v27, %v3098_v20 }
 0x3c3   : > { %v2168_v25 = vpop.eup %2167  ;;  %1511 = vadd.xlane.f32.xlu1 %v1510_v61 }
 0x3c4   : > { %v3107_v12 = vpop.eup %2169  ;;  %v1227_v5 = vpop.xlane.xlu0 %1226  ;;  %v3111_v8 = vmul.f32 %v2168_v25, %v682_v57  ;;  %v685_v57 = vadd.f32 %v3079_v10, %v684_v52 }
 0x3c5   : > { %v1299_v22 = vsub.f32 %v2970_v16, %v1227_v5  ;;  %v1300_v0 = vsub.f32 %v2972_v15, %v1227_v5  ;;  %v1492_v28 = vadd.f32 %v3107_v12, %v2822_v63  ;;  %v3119_v23 = vpop.eup %2171  ;;  %v687_v63 = vpop.f32.mrf.mxu0 }
 0x3c6   : > { %v3121_v16 = vpop.eup %2173 }
 0x3c7   : > { %v1407_v49 = vmul.f32 1.442695, %v1299_v22  ;;  %v1409_v4 = vmul.f32 1.442695, %v1300_v0  ;;  %3425 = vst [vmem:[#allocation29_spill] sm:$0xff] %v3121_v16  ;;  %v1498_v35 = vadd.f32 %v3121_v16, %v3119_v23 }
 0x3c9   : > { %2175 = vpow2.f32 %v1407_v49  ;;  %1493 = vadd.xlane.f32.xlu0 %v1492_v28 }
 0x3ca   : > { %2177 = vpow2.f32 %v1409_v4 }
 0x3cb   : > { %2179 = vpow2.f32 %v1399_v43 }
 0x3cc   : > { %v1467_v15 = vpop.xlane.xlu0 %1466 }
 0x3cd   : > { %2181 = vrcp.f32 %v1467_v15  ;;  %v690_v52 = vpop.f32.mrf.mxu0 }
 0x3ce   : > { %2183 = vpow2.f32 %v1401_v26 }
 0x3cf   : > { %v3123_v1 = vpop.eup %2175 }
 0x3d0   : > { %v3127_v46 = vpop.eup %2177 }
 0x3d1   : > { %3426 = vst [vmem:[#allocation30_spill] sm:$0xff] %v3127_v46  ;;  %1499 = vadd.xlane.f32.xlu0 %v1498_v35  ;;  %v1513_v60 = vadd.f32 %v3127_v46, %v3123_v1  ;;  %v3131_v61 = vpop.eup %2179 }
 0x3d3   : > { %v2182_v36 = vpop.eup %2181  ;;  %1514 = vadd.xlane.f32.xlu2 %v1513_v60 }
 0x3d4   : > { %v3134_v25 = vpop.eup %2183  ;;  %v1230_v39 = vpop.xlane.xlu0 %1229  ;;  %v3136_v5 = vmul.f32 %v2182_v36, %v685_v57 }
 0x3d5   : > { %3427 = vst [vmem:[#allocation31_spill] sm:$0xff] %v3134_v25  ;;  %v1301_v22 = vsub.f32 %v2982_v2, %v1230_v39  ;;  %v1302_v0 = vsub.f32 %v2984_v62, %v1230_v39  ;;  %v1507_v4 = vadd.f32 %v3134_v25, %v3131_v61  ;;  %v688_v62 = vadd.f32 %v3079_v10, %v687_v63  ;;  %v693_v57 = vpop.f32.mrf.mxu0  ;;  %v3434_v25 = vld [vmem:[#allocation22_spill] sm:$0xff] }
 0x3d7   : > { %v1411_v17 = vmul.f32 1.442695, %v1301_v22  ;;  %v1413_v49 = vmul.f32 1.442695, %v1302_v0 }
 0x3d9   : > { %2185 = vpow2.f32 %v1411_v17  ;;  %1508 = vadd.xlane.f32.xlu0 %v1507_v4 }
 0x3da   : > { %2187 = vpow2.f32 %v1413_v49 }
 0x3dc   : > { %v1470_v28 = vpop.xlane.xlu0 %1469 }
 0x3dd   : > { %2189 = vrcp.f32 %v1470_v28  ;;  %v3155_v4 = vpop.f32.mrf.mxu0 }
 0x3df   : > { %v3142_v43 = vpop.eup %2185 }
 0x3e0   : > { %v3144_v26 = vpop.eup %2187 }
 0x3e1   : > { %3428 = vst [vmem:[#allocation32_spill] sm:$0xff] %v3144_v26  ;;  %v1516_v2 = vadd.f32 %v3144_v26, %v3142_v43 }
 0x3e3   : > { %v2190_v15 = vpop.eup %2189  ;;  %1517 = vadd.xlane.f32.xlu0 %v1516_v2  ;;  %v691_v2 = vadd.f32 %v3079_v10, %v690_v52 }
 0x3e4   : > { %v1233_v35 = vpop.xlane.xlu0 %1232  ;;  %v3149_v60 = vmul.f32 %v2190_v15, %v688_v62 }
 0x3e5   : > { %v1303_v36 = vsub.f32 %v2994_v14, %v1233_v35  ;;  %v1304_v39 = vsub.f32 %v2996_v24, %v1233_v35  ;;  %v3170_v16 = vpop.f32.mrf.mxu0 }
 0x3e7   : > { %v1415_v22 = vmul.f32 1.442695, %v1303_v36  ;;  %v1417_v0 = vmul.f32 1.442695, %v1304_v39  ;;  %v1311_v36 = vsub.f32 %v2845_v45, %v3008_v32 }
 0x3e9   : > { %2191 = vpow2.f32 %v1415_v22  ;;  %v1431_v52 = vmul.f32 1.442695, %v1311_v36 }
 0x3ea   : > { %2193 = vpow2.f32 %v1417_v0  ;;  %v3430_v0 = vld [vmem:[#allocation20_spill] sm:$0xff] }
 0x3ec   : > { %v1473_v17 = vpop.xlane.xlu0 %1472 }
 0x3ed   : > { %2195 = vrcp.f32 %v1473_v17  ;;  %v1312_v17 = vsub.f32 %v3430_v0, %v3008_v32 }
 0x3ef   : > { %v3153_v49 = vpop.eup %2191 }
 0x3f0   : > { %v3157_v63 = vpop.eup %2193 }
 0x3f1   : > { %3429 = vst [vmem:[#allocation33_spill] sm:$0xff] %v3157_v63  ;;  %v1519_v28 = vadd.f32 %v3157_v63, %v3153_v49 }
 0x3f3   : > { %v2196_v14 = vpop.eup %2195  ;;  %1520 = vadd.xlane.f32.xlu1 %v1519_v28  ;;  %v1433_v28 = vmul.f32 1.442695, %v1312_v17 }
 0x3f4   : > { %v1236_v24 = vpop.xlane.xlu0 %1235  ;;  %v3162_v62 = vmul.f32 %v2196_v14, %v691_v2  ;;  %v1254_v2 = vpop.xlane.xlu2 %1253 }
 0x3f5   : > { %v1305_v15 = vsub.f32 %v3010_v51, %v1236_v24  ;;  %v1306_v35 = vsub.f32 %v3012_v33, %v1236_v24  ;;  %v1317_v33 = vsub.f32 %v2888_v6, %v1254_v2  ;;  %v1248_v24 = vpop.xlane.xlu1 %1247  ;;  %v1318_v32 = vsub.f32 %v2924_v47, %v1254_v2 }
 0x3f7   : > { %v1419_v39 = vmul.f32 1.442695, %v1305_v15  ;;  %v1421_v22 = vmul.f32 1.442695, %v1306_v35  ;;  %v694_v35 = vadd.f32 %v3079_v10, %v693_v57  ;;  %v1445_v0 = vmul.f32 1.442695, %v1318_v32 }
 0x3f9   : > { %2197 = vpow2.f32 %v1419_v39  ;;  %v3181_v39 = vpop.f32.mrf.mxu0 }
 0x3fa   : > { %2199 = vpow2.f32 %v1421_v22  ;;  %v1443_v22 = vmul.f32 1.442695, %v1317_v33  ;;  %v1314_v33 = vsub.f32 %v3434_v25, %v1248_v24 }
 0x3fc   : > { %v1476_v14 = vpop.xlane.xlu0 %1475 }
 0x3fd   : > { %2201 = vrcp.f32 %v1476_v14  ;;  %v3433_v14 = vld [vmem:[#allocation19_spill] sm:$0xff] }
 0x3fe   : > { %2203 = vpow2.f32 %v1431_v52  ;;  %v1313_v30 = vsub.f32 %v3433_v14, %v1248_v24 }
 0x3ff   : > { %v3172_v51 = vpop.eup %2197  ;;  %2205 = vpow2.f32 %v1433_v28 }
 0x400   : > { %v3175_v45 = vpop.eup %2199  ;;  %2207 = vpow2.f32 %v1443_v22 }
 0x401   : > { %3431 = vst [vmem:[#allocation20_spill] sm:$0xff] %v3175_v45  ;;  %v1522_v15 = vadd.f32 %v3175_v45, %v3172_v51  ;;  %2209 = vpow2.f32 %v1445_v0  ;;  %v3201_v22 = vpop.f32.mrf.mxu0 }
 0x403   : > { %v2202_v36 = vpop.eup %2201  ;;  %1523 = vadd.xlane.f32.xlu2 %v1522_v15  ;;  %v3195_v15 = vpop.xlane.xlu1 %1454 }
 0x404   : > { %v1239_v17 = vpop.xlane.xlu0 %1238  ;;  %v3183_v52 = vmul.f32 %v2202_v36, %v694_v35  ;;  %v3185_v6 = vpop.eup %2203 }
 0x405   : > { %v1307_v28 = vsub.f32 %v3024_v42, %v1239_v17  ;;  %v1308_v47 = vsub.f32 %v3026_v55, %v1239_v17  ;;  %v3189_v2 = vpop.eup %2205  ;;  %v1435_v42 = vmul.f32 1.442695, %v1313_v30  ;;  %v1437_v55 = vmul.f32 1.442695, %v1314_v33 }
 0x406   : > { %3432 = vst [vmem:[#allocation34_spill] sm:$0xff] %v3189_v2  ;;  %v1531_v32 = vadd.f32 %v3189_v2, %v3185_v6  ;;  %v3199_v36 = vpop.eup %2207 }
 0x407   : > { %v1423_v57 = vmul.f32 1.442695, %v1307_v28  ;;  %v1425_v56 = vmul.f32 1.442695, %v1308_v47  ;;  %v3203_v17 = vpop.eup %2209 }
 0x409   : > { %2211 = vpow2.f32 %v1423_v57 }
 0x40a   : > { %2213 = vpow2.f32 %v1425_v56  ;;  %v1540_v56 = vadd.f32 %v3203_v17, %v3199_v36 }
 0x40b   : > { %1532 = vadd.xlane.f32.xlu2 %v1531_v32  ;;  %2215 = vpow2.f32 %v1435_v42  ;;  %v1251_v0 = vpop.xlane.xlu1 %1250  ;;  %v708_v32 = vpop.f32.mrf.mxu0 }
 0x40c   : > { %v3197_v35 = vpop.xlane.xlu0 %1478  ;;  %2217 = vpow2.f32 %v1437_v55  ;;  %v1315_v42 = vsub.f32 %v2883_v50, %v1251_v0  ;;  %v1316_v46 = vsub.f32 %v2913_v37, %v1251_v0 }
 0x40e   : > { %v1441_v26 = vmul.f32 1.442695, %v1316_v46 }
 0x40f   : > { %v3205_v25 = vpop.eup %2211 }
 0x410   : > { %v3207_v24 = vpop.eup %2213 }
 0x411   : > { %3435 = vst [vmem:[#allocation19_spill] sm:$0xff] %v3207_v24  ;;  %v1525_v30 = vadd.f32 %v3207_v24, %v3205_v25  ;;  %v3213_v47 = vpop.eup %2215 }
 0x412   : > { %v3217_v33 = vpop.eup %2217 }
 0x413   : > { %1541 = vadd.xlane.f32.xlu2 %v1540_v56  ;;  %1526 = vadd.xlane.f32.xlu0 %v1525_v30  ;;  %3436 = vst [vmem:[#allocation22_spill] sm:$0xff] %v3217_v33  ;;  %v1534_v56 = vadd.f32 %v3217_v33, %v3213_v47  ;;  %v1439_v30 = vmul.f32 1.442695, %v1315_v42  ;;  %v711_v50 = vpop.f32.mrf.mxu0  ;;  %v1449_v24 = vpop.xlane.xlu1 %1448 }
 0x414   : > { %v1242_v28 = vpop.xlane.xlu0 %1241  ;;  %v712_v2 = vadd.f32 %v3079_v10, %v711_v50 }
 0x415   : > { %v1309_v14 = vsub.f32 %v3046_v29, %v1242_v28  ;;  %v1310_v57 = vsub.f32 %v3048_v31, %v1242_v28 }
 0x417   : > { %v1427_v55 = vmul.f32 1.442695, %v1309_v14  ;;  %v1429_v27 = vmul.f32 1.442695, %v1310_v57 }
 0x419   : > { %2219 = vpow2.f32 %v1427_v55 }
 0x41a   : > { %2221 = vpow2.f32 %v1429_v27 }
 0x41b   : > { %1535 = vadd.xlane.f32.xlu0 %v1534_v56  ;;  %2223 = vpow2.f32 %v1439_v30  ;;  %v714_v46 = vpop.f32.mrf.mxu0  ;;  %v1497_v56 = vpop.xlane.xlu2 %1496 }
 0x41c   : > { %v1482_v29 = vpop.xlane.xlu0 %1481  ;;  %2225 = vpow2.f32 %v1441_v26  ;;  %v715_v45 = vadd.f32 %v3079_v10, %v714_v46  ;;  %v706_v46 = vadd.f32 %v3079_v10, %v3201_v22  ;;  %v1503_v50 = vpop.xlane.xlu1 %1502 }
 0x41d   : > { %2227 = vrcp.f32 %v1497_v56 }
 0x41f   : > { %v3223_v63 = vpop.eup %2219 }
 0x420   : > { %v3225_v31 = vpop.eup %2221 }
 0x421   : > { %3437 = vst [vmem:[#allocation35_spill] sm:$0xff] %v3225_v31  ;;  %v1528_v28 = vadd.f32 %v3225_v31, %v3223_v63  ;;  %v3229_v0 = vpop.eup %2223 }
 0x422   : > { %v3231_v14 = vpop.eup %2225 }
 0x423   : > { %1529 = vadd.xlane.f32.xlu1 %v1528_v28  ;;  %3438 = vst [vmem:[#allocation36_spill] sm:$0xff] %v3231_v14  ;;  %v1537_v27 = vadd.f32 %v3231_v14, %v3229_v0  ;;  %v717_v55 = vpop.f32.mrf.mxu0  ;;  %v2228_v30 = vpop.eup %2227  ;;  %v709_v14 = vadd.f32 %v3079_v10, %v708_v32 }
 0x424   : > { %v1485_v37 = vpop.xlane.xlu0 %1484  ;;  %v1591_v33 = vmul.f32 %v2228_v30, %v715_v45  ;;  %v703_v45 = vadd.f32 %v3079_v10, %v3181_v39 }
 0x42b   : > { %1538 = vadd.xlane.f32.xlu1 %v1537_v27  ;;  %v720_v28 = vpop.f32.mrf.mxu0 }
 0x42c   : > { %v1488_v57 = vpop.xlane.xlu0 %1487 }
 0x433   : > { %v723_v30 = vpop.f32.mrf.mxu0 }
 0x434   : > { %v1491_v42 = vpop.xlane.xlu0 %1490 }
 0x435   : > { %2229 = vrcp.f32 %v1491_v42 }
 0x43b   : > { %v2230_v31 = vpop.eup %2229 }
 0x43c   : > { %v1494_v26 = vpop.xlane.xlu0 %1493 }
 0x43d   : > { %2231 = vrcp.f32 %v1494_v26 }
 0x43e   : > { %2233 = vrcp.f32 %v1488_v57 }
 0x43f   : > { %2235 = vrcp.f32 %v1485_v37  ;;  %v1589_v37 = vmul.f32 %v2230_v31, %v709_v14  ;;  %v697_v31 = vadd.f32 %v3079_v10, %v3155_v4 }
 0x440   : > { %2237 = vrcp.f32 %v1482_v29 }
 0x441   : > { %2239 = vrcp.f32 %v3197_v35 }
 0x443   : > { %v2232_v27 = vpop.eup %2231 }
 0x444   : > { %1640 = vxpose.xlu0.b32.start [1/16] (narrow) %v1591_v33, 8  ;;  %v1500_v42 = vpop.xlane.xlu0 %1499  ;;  %v1590_v56 = vmul.f32 %v2232_v27, %v712_v2  ;;  %v2234_v26 = vpop.eup %2233  ;;  %v700_v2 = vadd.f32 %v3079_v10, %v3170_v16  ;;  %v718_v33 = vadd.f32 %v3079_v10, %v717_v55  ;;  %v721_v16 = vadd.f32 %v3079_v10, %v720_v28 }
 0x445   : > { %2241 = vrcp.f32 %v1500_v42  ;;  %v2236_v57 = vpop.eup %2235  ;;  %v1588_v29 = vmul.f32 %v2234_v26, %v706_v46  ;;  %v726_v55 = vpop.f32.mrf.mxu0 }
 0x446   : > { %2002 = vmatpush.lsf.msrb.mxu3 %v1590_v56  ;;  %v2238_v32 = vpop.eup %2237  ;;  %v1587_v27 = vmul.f32 %v2236_v57, %v703_v45  ;;  %2243 = vrcp.f32 %v1503_v50  ;;  %v1506_v56 = vpop.xlane.xlu2 %1505  ;;  %v724_v57 = vadd.f32 %v3079_v10, %v723_v30 }
 0x447   : > { %v2240_v35 = vpop.eup %2239  ;;  %v1586_v39 = vmul.f32 %v2238_v32, %v700_v2  ;;  %2245 = vrcp.f32 %v3050_v21  ;;  %v3439_v21 = vld [vmem:[#allocation14_spill] sm:$0xff]  ;;  %v1512_v2 = vpop.xlane.xlu1 %1511 }
 0x448   : > { %2003 = vmatpush.lsf.msrb.mxu3 %v1589_v37  ;;  %v1585_v42 = vmul.f32 %v2240_v35, %v697_v31  ;;  %2247 = vrcp.f32 %v1506_v56  ;;  %v3442_v35 = vld [vmem:[#allocation11_spill] sm:$0xff] }
 0x449   : > { %2249 = vrcp.f32 %v3195_v15  ;;  %v3440_v15 = vld [vmem:[#allocation13_spill] sm:$0xff] }
 0x44a   : > { %2004 = vmatpush.lsf.msrb.mxu3 %v1588_v29  ;;  %2251 = vrcp.f32 %v3016_v38  ;;  %v3441_v29 = vld [vmem:[#allocation12_spill] sm:$0xff] }
 0x44b   : > { %v2242_v22 = vpop.eup %2241  ;;  %2253 = vrcp.f32 %v1449_v24  ;;  %v670_v24 = vadd.f32 %v3079_v10, %v3441_v29 }
 0x44c   : > { %2005 = vmatpush.lsf.msrb.mxu3 %v1587_v27  ;;  %v1592_v14 = vmul.f32 %v2242_v22, %v718_v33  ;;  %v2244_v26 = vpop.eup %2243  ;;  %v1509_v37 = vpop.xlane.xlu0 %1508 }
 0x44d   : > { %v1593_v4 = vmul.f32 %v2244_v26, %v721_v16  ;;  %v2246_v46 = vpop.eup %2245  ;;  %2255 = vrcp.f32 %v1509_v37 }
 0x44e   : > { %2006 = vmatpush.lsf.msrb.mxu3 %v1586_v39  ;;  %1641 = vxpose.xlu0.b32.cont [2/16] (narrow) %v1592_v14, 8  ;;  %v2248_v28 = vpop.eup %2247  ;;  %2257 = vrcp.f32 %v1512_v2  ;;  %v1515_v14 = vpop.xlane.xlu2 %1514 }
 0x44f   : > { %v1594_v45 = vmul.f32 %v2248_v28, %v724_v57  ;;  %2259 = vrcp.f32 %v1515_v14 }
 0x450   : > { %2007 = vmatpush.lsf.msrb.mxu3 %v1585_v42 }
 0x452   : > { %2008 = vmatpush.lsf.msrb.mxu3 %v3183_v52  ;;  %v676_v52 = vadd.f32 %v3079_v10, %v3439_v21 }
 0x454   : > { %2009 = vmatpush.lsf.msrb.mxu3 %v3162_v62  ;;  %v2250_v62 = vpop.eup %2249  ;;  %v1578_v38 = vmul.f32 %v2246_v46, %v676_v52 }
 0x455   : > { %v2252_v50 = vpop.eup %2251 }
 0x456   : > { %2010 = vmatpush.lsf.msrb.mxu3 %v3149_v60  ;;  %1642 = vxpose.xlu0.b32.cont [3/16] (narrow) %v1593_v4, 8  ;;  %v673_v60 = vadd.f32 %v3079_v10, %v3440_v15  ;;  %v2254_v30 = vpop.eup %2253  ;;  %v1576_v33 = vmul.f32 %v2252_v50, %v670_v24  ;;  %v1518_v16 = vpop.xlane.xlu0 %1517 }
 0x457   : > { %v2256_v27 = vpop.eup %2255  ;;  %2261 = vrcp.f32 %v1518_v16  ;;  %v3462_v16 = vld [vmem:[#allocation26_spill] sm:$0xff] }
 0x458   : > { %2011 = vmatpush.lsf.msrb.mxu3 %v3136_v5  ;;  %v729_v5 = vpop.f32.mrf.mxu0  ;;  %v1577_v32 = vmul.f32 %v2250_v62, %v673_v60  ;;  %v2258_v42 = vpop.eup %2257 }
 0x459   : > { %v730_v56 = vadd.f32 %v3079_v10, %v729_v5  ;;  %v2260_v4 = vpop.eup %2259 }
 0x45a   : > { %2012 = vmatpush.lsf.msrb.mxu3 %v3111_v8  ;;  %v667_v8 = vadd.f32 %v3079_v10, %v3442_v35 }
 0x45b   : > { %v1596_v26 = vmul.f32 %v2258_v42, %v730_v56 }
 0x45c   : > { %2013 = vmatpush.lsf.msrb.mxu3 %v3084_v3  ;;  %v727_v3 = vadd.f32 %v3079_v10, %v726_v55  ;;  %v1575_v22 = vmul.f32 %v2254_v30, %v667_v8 }
 0x45d   : > { %v2262_v21 = vpop.eup %2261 }
 0x45e   : > { %2014 = vmatpush.lsf.msrb.mxu3 %v1578_v38  ;;  %1643 = vxpose.xlu0.b32.cont [4/16] (narrow) %v1594_v45, 8  ;;  %v1595_v31 = vmul.f32 %v2256_v27, %v727_v3  ;;  %v3444_v27 = vld [vmem:[#allocation16_spill] sm:$0xff] }
 0x460   : > { %2015 = vmatpush.lsf.msrb.mxu3 %v1577_v32  ;;  %v732_v39 = vpop.f32.mrf.mxu0 }
 0x461   : > { %v733_v55 = vadd.f32 %v3079_v10, %v732_v39 }
 0x462   : > { %2016 = vmatpush.lsf.msrb.mxu3 %v1576_v33 }
 0x463   : > { %v1597_v37 = vmul.f32 %v2260_v4, %v733_v55  ;;  %v3463_v4 = vld [vmem:[#allocation29_spill] sm:$0xff] }
 0x464   : > { %2017 = vmatpush.lsf.msrb.mxu3 %v1575_v22 }
 0x465   : > { %2018 = vllmr.1.mxu3 }
 0x466   : > { %1644 = vxpose.xlu0.b32.cont [5/16] (narrow) %v1595_v31, 8  ;;  %v1521_v28 = vpop.xlane.xlu1 %1520  ;;  %v3445_v31 = vld [vmem:[#allocation17_spill] sm:$0xff] }
 0x467   : > { %2263 = vrcp.f32 %v1521_v28 }
 0x468   : > { %v735_v46 = vpop.f32.mrf.mxu0 }
 0x469   : > { %v736_v52 = vadd.f32 %v3079_v10, %v735_v46  ;;  %v3464_v46 = vld [vmem:[#allocation25_spill] sm:$0xff] }
 0x46b   : > { %v1598_v62 = vmul.f32 %v2262_v21, %v736_v52 }
 0x46d   : > { %v2264_v60 = vpop.eup %2263 }
 0x46e   : > { %1645 = vxpose.xlu0.b32.cont [6/16] (narrow) %v1596_v26, 8 }
 0x470   : > { %v738_v57 = vpop.f32.mrf.mxu0 }
 0x471   : > { %v739_v38 = vadd.f32 %v3079_v10, %v738_v57 }
 0x473   : > { %v1599_v45 = vmul.f32 %v2264_v60, %v739_v38  ;;  %v1762_v38 = vld [vmem:[%s2523_s25] sm:$0xff]  ;;  %s2329_s25 = scalar_lea.hbm %s3381_s8, 16 }
 0x474   : > { %p2331_p8 = scmp.lt.s32.totalorder %s2329_s25, %s2325_s22 }
 0x476   : > { %1646 = vxpose.xlu0.b32.cont [7/16] (narrow) %v1597_v37, 8  ;;  %v1524_v15 = vpop.xlane.xlu2 %1523  ;;  %p2332_p10 = por %p2331_p8, %p2330_p7 }
 0x477   : > { %2265 = vrcp.f32 %v1524_v15  ;;  %v1765_v15 = vstv %s1763_s26 }
 0x478   : > { %v741_v50 = vpop.f32.mrf.mxu0  ;;  %p2333_p13 = pnand %p2332_p10, %p2328_p6 }
 0x479   : > { %v742_v24 = vadd.f32 %v3079_v10, %v741_v50 }
 0x47d   : > { %v2266_v29 = vpop.eup %2265 }
 0x47e   : > { %1647 = vxpose.xlu0.b32.cont [8/16] (narrow) %v1598_v62, 8  ;;  %v1600_v32 = vmul.f32 %v2266_v29, %v742_v24 }
 0x480   : > { %v744_v30 = vpop.f32.mrf.mxu0 }
 0x486   : > { %2019 = vmatmul.lmr.bf16.vlgmr.msra.gmra.1.mxu3  ;;  %1648 = vxpose.xlu0.b32.cont [9/16] (narrow) %v1599_v45, 8  ;;  %v1527_v5 = vpop.xlane.xlu0 %1526 }
 0x487   : > { %1692 = vmatpush.msra.mxu3 %v3199_v36  ;;  %2267 = vrcp.f32 %v1527_v5  ;;  %v745_v36 = vadd.f32 %v3079_v10, %v744_v30 }
 0x489   : > { %1693 = vmatpush.msra.mxu3 %v3229_v0 }
 0x48b   : > { %1694 = vmatpush.msra.mxu3 %v3213_v47  ;;  %v1533_v47 = vpop.xlane.xlu2 %1532 }
 0x48d   : > { %1695 = vmatpush.msra.mxu3 %v3185_v6  ;;  %v2268_v35 = vpop.eup %2267  ;;  %v747_v6 = vpop.f32.mrf.mxu0 }
 0x48e   : > { %1649 = vxpose.xlu0.b32.cont [10/16] (narrow) %v1600_v32, 8  ;;  %v1601_v0 = vmul.f32 %v2268_v35, %v745_v36 }
 0x48f   : > { %1696 = vmatpush.msra.mxu3 %v3223_v63  ;;  %v748_v63 = vadd.f32 %v3079_v10, %v747_v6 }
 0x491   : > { %1697 = vmatpush.msra.mxu3 %v3205_v25 }
 0x493   : > { %1698 = vmatpush.msra.mxu3 %v3172_v51 }
 0x495   : > { %1699 = vmatpush.msra.mxu3 %v3153_v49  ;;  %v1536_v49 = vpop.xlane.xlu0 %1535 }
 0x496   : > { %v1530_v8 = vpop.xlane.xlu1 %1529  ;;  %1650 = vxpose.xlu0.b32.cont [11/16] (narrow) %v1601_v0, 8 }
 0x497   : > { %2269 = vrcp.f32 %v1530_v8  ;;  %1700 = vmatpush.msra.mxu3 %v3142_v43 }
 0x498   : > { %2271 = vrcp.f32 %v1533_v47 }
 0x499   : > { %1701 = vmatpush.msra.mxu3 %v3123_v1  ;;  %v3443_v1 = vld [vmem:[#allocation15_spill] sm:$0xff]  ;;  %2273 = vrcp.f32 %v1536_v49 }
 0x49a   : > { %v751_v2 = vadd.f32 %v3079_v10, %v3443_v1 }
 0x49b   : > { %1702 = vmatpush.msra.mxu3 %v3098_v20 }
 0x49d   : > { %v2270_v25 = vpop.eup %2269  ;;  %1703 = vmatpush.msra.mxu3 %v3131_v61 }
 0x49e   : > { %v1602_v51 = vmul.f32 %v2270_v25, %v748_v63  ;;  %v2272_v43 = vpop.eup %2271  ;;  %v1539_v33 = vpop.xlane.xlu1 %1538 }
 0x49f   : > { %1704 = vmatpush.msra.mxu3 %v3056_v18  ;;  %v1603_v20 = vmul.f32 %v2272_v43, %v751_v2  ;;  %v2274_v61 = vpop.eup %2273  ;;  %v754_v18 = vadd.f32 %v3079_v10, %v3444_v27  ;;  %2275 = vrcp.f32 %v1539_v33 }
 0x4a0   : > { %1651 = vxpose.xlu0.b32.cont [12/16] (narrow) %v1602_v51, 8 }
 0x4a1   : > { %1705 = vmatpush.msra.mxu3 %v3036_v41  ;;  %v1604_v3 = vmul.f32 %v2274_v61, %v754_v18  ;;  %v1542_v41 = vpop.xlane.xlu2 %1541 }
 0x4a2   : > { %2277 = vrcp.f32 %v1542_v41 }
 0x4a3   : > { %1706 = vmatpush.msra.mxu3 %v3119_v23  ;;  %v757_v23 = vadd.f32 %v3079_v10, %v3445_v31 }
 0x4a5   : > { %1707 = vmatpush.msra.mxu3 %v2934_v9  ;;  %v2276_v22 = vpop.eup %2275  ;;  %v3446_v9 = vld [vmem:[#allocation18_spill] sm:$0xff] }
 0x4a6   : > { %v1605_v39 = vmul.f32 %v2276_v22, %v757_v23  ;;  %v760_v42 = vadd.f32 %v3079_v10, %v3446_v9  ;;  %v3447_v10 = vld [vmem:[#allocation23_spill] sm:$0xff] }
 0x4a8   : > { %1652 = vxpose.xlu0.b32.cont [13/16] (narrow) %v1603_v20, 8  ;;  %v2278_v14 = vpop.eup %2277 }
 0x4a9   : > { %v1606_v56 = vmul.f32 %v2278_v14, %v760_v42 }
 0x4b0   : > { %1653 = vxpose.xlu0.b32.cont [14/16] (narrow) %v1604_v3, 8 }
 0x4b8   : > { %1654 = vxpose.xlu0.b32.cont [15/16] (narrow) %v1605_v39, 8 }
 0x4c0   : > { %1655 = vxpose.xlu0.b32.end [16/16] (narrow) %v1606_v56, 8 }
 0x4ec   : > { %v1656_v26 = vpop.trf.xlu0 }
 0x4ed   : > { %1708 = vmatmul.f32.vlgmr.msra.gmra.mxu3 %v1656_v26 }
 0x4ee   : > { %1712 = vmatpush.msra.mxu3 %v3107_v12  ;;  %v3460_v12 = vld [vmem:[#allocation31_spill] sm:$0xff] }
 0x4f0   : > { %1713 = vmatpush.msra.mxu3 %v3092_v34  ;;  %v3459_v34 = vld [vmem:[#allocation28_spill] sm:$0xff] }
 0x4f2   : > { %1714 = vmatpush.msra.mxu3 %v3082_v54  ;;  %v3458_v54 = vld [vmem:[#allocation30_spill] sm:$0xff] }
 0x4f4   : > { %1715 = vmatpush.msra.mxu3 %v3070_v59  ;;  %v3448_v59 = vld [vmem:[#allocation21_spill] sm:$0xff] }
 0x4f6   : > { %1716 = vmatpush.msra.mxu3 %v3060_v48  ;;  %v3449_v48 = vld [vmem:[#allocation24_spill] sm:$0xff] }
 0x4f8   : > { %1717 = vmatpush.msra.mxu3 %v3032_v58  ;;  %v3457_v58 = vld [vmem:[#allocation32_spill] sm:$0xff] }
 0x4fa   : > { %1718 = vmatpush.msra.mxu3 %v3018_v53  ;;  %v3456_v53 = vld [vmem:[#allocation33_spill] sm:$0xff] }
 0x4fc   : > { %1719 = vmatpush.msra.mxu3 %v3002_v40  ;;  %v3450_v40 = vld [vmem:[#allocation36_spill] sm:$0xff] }
 0x4fe   : > { %1720 = vmatpush.msra.mxu3 %v2988_v7  ;;  %v3451_v7 = vld [vmem:[#allocation22_spill] sm:$0xff] }
 0x500   : > { %1721 = vmatpush.msra.mxu3 %v2976_v13  ;;  %v3452_v13 = vld [vmem:[#allocation34_spill] sm:$0xff] }
 0x502   : > { %1722 = vmatpush.msra.mxu3 %v2964_v44  ;;  %v3453_v44 = vld [vmem:[#allocation35_spill] sm:$0xff] }
 0x504   : > { %1723 = vmatpush.msra.mxu3 %v2952_v19  ;;  %v3454_v19 = vld [vmem:[#allocation19_spill] sm:$0xff] }
 0x506   : > { %1724 = vmatpush.msra.mxu3 %v2938_v11  ;;  %v3455_v11 = vld [vmem:[#allocation20_spill] sm:$0xff] }
 0x508   : > { %1725 = vmatpush.msra.mxu3 %v3447_v10 }
 0x509   : > { %v1689_v55 = vpop.f32.mrf.mxu3 }
 0x50a   : > { %1726 = vmatpush.msra.mxu3 %v3448_v59 }
 0x50c   : > { %1727 = vmatpush.msra.mxu3 %v3449_v48 }
 0x50d   : > { %2020 = vmatmul.lmr.bf16.vlgmr.msra.gmra.1.mxu3 }
 0x50e   : > { %1732 = vmatpush.msra.mxu3 %v3203_v17  ;;  %v3461_v17 = vld [vmem:[#allocation27_spill] sm:$0xff] }
 0x510   : > { %1733 = vmatpush.msra.mxu3 %v3450_v40 }
 0x512   : > { %1734 = vmatpush.msra.mxu3 %v3451_v7 }
 0x514   : > { %1735 = vmatpush.msra.mxu3 %v3452_v13 }
 0x516   : > { %1736 = vmatpush.msra.mxu3 %v3453_v44 }
 0x518   : > { %1737 = vmatpush.msra.mxu3 %v3454_v19 }
 0x51a   : > { %1738 = vmatpush.msra.mxu3 %v3455_v11 }
 0x51c   : > { %1739 = vmatpush.msra.mxu3 %v3456_v53 }
 0x51e   : > { %1740 = vmatpush.msra.mxu3 %v3457_v58 }
 0x520   : > { %1741 = vmatpush.msra.mxu3 %v3458_v54 }
 0x522   : > { %1742 = vmatpush.msra.mxu3 %v3459_v34 }
 0x524   : > { %1743 = vmatpush.msra.mxu3 %v3460_v12 }
 0x526   : > { %1744 = vmatpush.msra.mxu3 %v3461_v17 }
 0x528   : > { %1745 = vmatpush.msra.mxu3 %v3462_v16 }
 0x52a   : > { %1746 = vmatpush.msra.mxu3 %v3463_v4 }
 0x52c   : > { %1747 = vmatpush.msra.mxu3 %v3464_v46 }
 0x52d   : > { %1748 = vmatmul.f32.vlgmr.msra.gmra.mxu3 %v1656_v26 }
 0x570   : > { %v1709_v37 = vpop.f32.mrf.mxu3 }
 0x571   : > { %v1710_v57 = vadd.f32 %v1709_v37, %v1689_v55 }
 0x590   : > { %v1729_v28 = vpop.f32.mrf.mxu3 }
 0x5b0   : > { %v1749_v21 = vpop.f32.mrf.mxu3 }
 0x5b1   : > { %v1750_v52 = vadd.f32 %v1749_v21, %v1729_v28 }
 0x5b3   : > { %v1754_v62 = vrot.slane %v1750_v52, 4 }
 0x5b5   : > { %v1755_v60 = vsel %vm357_vm0, %v1710_v57, %v1754_v62 }
 0x5b6   : > { %v1766_v45 = vmul.f32 %v1765_v15, %v1755_v60 }
 0x5b8   : > { %v1767_v50 = vadd.f32 %v1766_v45, %v1762_v38 }
 0x5ba   : > { %1768 = vst [vmem:[%s336_s17] sm:$0xff] %v1767_v50 }
 0x5bb   : > { %2336 = shalt.err (!%p2333_p13)
}
 0x5bc   : > { %2023 = dma.vmem_to_hbm [thread:$0]  (%p2494_p9), %s1784_s13, 128, %s1786_s24, %s1770_s10  }
 0x5bd PF: > { %s1797_s15 = sand.u32 1, %s2371_s29   ;;  %p2030_p0 = pnand %p1869_p12, %p2501_p11 }
 0x5be   : > { %s1798_s7 = scalar_lea.sflag [#allocation7], %s1797_s15 }
 0x5bf   : > { %p2031_p1 = pneg %p2030_p0 }
 0x5c1   : > { %2366 = dma.done.wait (%p2031_p1), %s1798_s7, 128  }
 0x5c2   : > { %2368 = vsyncadd (%p2031_p1), %s1798_s7, 4294967168  ;;  %s25_s12 = sadd.s32 1, %s2391_s12   ;;  %s3465_s29 = smov %s2375_s30 }
 0x5c3   : > { %p22_p2 = scmp.ge.s32.totalorder %s25_s12, 4   ;;  %s3466_s30 = smov %s2379_s9 }
 0x5c4   : > { %s3467_s9 = smov %s2499_s20  ;;  %s3468_s10 = smov %s2387_s11 }
 0x5c5   : > { %s3469_s11 = smov %s3471_s14  ;;  %24 = sbr.rel (!%p22_p2) target bundleno = 8 (0x8), region = 106 }
 0x5ca   :  { %1804 = vsyncpa [#allocation6], 1 }
 0x5cb   :  { %1806 = vsyncpa [#allocation6 + $0x1], 1 }
 0x5cc   :  { %1807 = vsyncpa [#allocation7], 1 }
 0x5cd   :  { %1809 = vsyncpa [#allocation7 + $0x1], 1 }

</bundles_post_ra>
